<compile_context>
chip_gen: v5e
topology: v5e:2x2
jax: 0.10.0
libtpu: 0.0.40
codegen_flags: <defaults>
</compile_context>

<pallas_src>
import functools

import jax
import jax.numpy as jnp
import numpy as np
from jax import lax
from jax.experimental import pallas as pl
from jax.experimental.pallas import tpu as pltpu


# -----------------------------------------------------------------------------
# Static tap tables for the k=4, s=2, p=1 transposed conv (sub-pixel decomposition)
#   output row parity a reads zero-padded-y row offsets _ROFF[a] with kernel rows _KH[a];
#   output col parity b reads the scratch's column-offset chunks (b, b+1) whose kernel
#   columns, in lane order, are _KW[b].
# -----------------------------------------------------------------------------
_KH = ((3, 1), (2, 0))
_KW = ((3, 1), (2, 0))
_ROFF = ((0, 1), (1, 2))


# -----------------------------------------------------------------------------
# Kernel: fused LeakyReLU -> Conv(4,2,1) -> ReLU -> ConvT(4,2,1) + BN partial stats
# -----------------------------------------------------------------------------
def _unet_inner_core_kernel(x_ref, edge_ref, wd_ref, wu_ref, u_ref, stats_ref, ypad_ref,
                            *, ho, wo, inner_nc):
    """One batch element (m = ho*wo down-sampled pixels).

    x_ref:     (1, 2, m, 8*cin)        bf16  tap-packed input (leading 2 = conv row offset,
                                             K packs the 8 (row/col parity, col offset) taps)
    edge_ref:  (m, 2)                  bf16  {0,1} keep masks: col0 -> ow > 0, col1 -> ow < wo-1
    wd_ref:    (2, 8*cin, inner)       bf16  K-packed down-conv weights per row offset
    wu_ref:    (4, 2, 2*inner, outer)  bf16  K-packed up-conv weights [phase 2a+b, row slot]
    u_ref:     (1, 4, m, outer)        bf16  pre-BN ConvT output, phase-major, channel-minor
    stats_ref: (1, 2, outer)           f32   per-element [sum, sum_of_squares] over pixels
    ypad_ref:  ((ho+2)*wo, 3*inner)    bf16  scratch: zero-padded, column-shift-packed ReLU(y)
    """
    m = ho * wo

    # ---- LeakyReLU(0.2) + down conv: two K=8*cin matmuls, f32 accumulation ---------------
    x0 = x_ref[0, 0]
    x1 = x_ref[0, 1]
    x0 = jnp.where(x0 >= 0, x0, x0 * 0.2)
    x1 = jnp.where(x1 >= 0, x1, x1 * 0.2)
    y = jnp.dot(x0, wd_ref[0], preferred_element_type=jnp.float32)
    y = y + jnp.dot(x1, wd_ref[1], preferred_element_type=jnp.float32)

    # ---- ReLU, then write the padded / column-shift-packed y into the VMEM scratch --------
    # Scratch row q = u*wo + j, chunk c in {0,1,2} holds y_zeropad[u, j + c]; every up-conv
    # lhs below is then a plain 2-D slice (no strided reshapes, no concat-pads).
    y_bf = jnp.maximum(y, 0.0).astype(jnp.bfloat16)                     # (m, inner)
    zrow = jnp.zeros((1, inner_nc), jnp.bfloat16)
    shift_dn = jnp.concatenate([zrow, y_bf[:m - 1]], axis=0)            # row p -> y[p-1]
    shift_up = jnp.concatenate([y_bf[1:], zrow], axis=0)                # row p -> y[p+1]
    keep0 = edge_ref[:, 0:1]                                            # zero where ow == 0
    keep2 = edge_ref[:, 1:2]                                            # zero where ow == wo-1
    zblk = jnp.zeros((wo, 3 * inner_nc), jnp.bfloat16)
    ypad_ref[0:wo, :] = zblk                                            # top pad row block
    ypad_ref[wo + m:2 * wo + m, :] = zblk                               # bottom pad row block
    ypad_ref[wo:wo + m, 0:inner_nc] = shift_dn * keep0                  # chunk c=0
    ypad_ref[wo:wo + m, inner_nc:2 * inner_nc] = y_bf                   # chunk c=1
    ypad_ref[wo:wo + m, 2 * inner_nc:3 * inner_nc] = shift_up * keep2   # chunk c=2

    # ---- transposed conv, 4-phase sub-pixel decomposition + BN partial statistics ---------
    s1 = None
    s2 = None
    for a in range(2):
        for b in range(2):
            p = 2 * a + b
            ks = b * inner_nc                       # lane start of the 2-chunk K slice
            r0, r1 = _ROFF[a]
            lhs0 = ypad_ref[r0 * wo:r0 * wo + m, ks:ks + 2 * inner_nc]
            lhs1 = ypad_ref[r1 * wo:r1 * wo + m, ks:ks + 2 * inner_nc]
            acc = jnp.dot(lhs0, wu_ref[p, 0], preferred_element_type=jnp.float32)
            acc = acc + jnp.dot(lhs1, wu_ref[p, 1], preferred_element_type=jnp.float32)
            u_ref[0, p] = acc.astype(u_ref.dtype)
            ps1 = jnp.sum(acc, axis=0, keepdims=True)
            ps2 = jnp.sum(acc * acc, axis=0, keepdims=True)
            s1 = ps1 if s1 is None else s1 + ps1
            s2 = ps2 if s2 is None else s2 + ps2
    stats_ref[0] = jnp.concatenate([s1, s2], axis=0)


def unet_inner_core(x_down, edge, wd, wu, *, ho, wo, inner_nc, outer_nc):
    n = x_down.shape[0]
    k8 = x_down.shape[-1]
    m = ho * wo
    kernel = functools.partial(_unet_inner_core_kernel, ho=ho, wo=wo, inner_nc=inner_nc)
    return pl.pallas_call(
        kernel,
        out_shape=(
            jax.ShapeDtypeStruct((n, 4, m, outer_nc), jnp.bfloat16),   # pre-BN u (phase-major)
            jax.ShapeDtypeStruct((n, 2, outer_nc), jnp.float32),       # BN partial sums
        ),
        grid_spec=pltpu.PrefetchScalarGridSpec(
            num_scalar_prefetch=0,
            grid=(n,),
            in_specs=[
                pl.BlockSpec((1, 2, m, k8), lambda i: (i, 0, 0, 0)),
                pl.BlockSpec((m, 2), lambda i: (0, 0)),
                pl.BlockSpec((2, k8, inner_nc), lambda i: (0, 0, 0)),
                pl.BlockSpec((4, 2, 2 * inner_nc, outer_nc), lambda i: (0, 0, 0, 0)),
            ],
            out_specs=(
                pl.BlockSpec((1, 4, m, outer_nc), lambda i: (i, 0, 0, 0)),
                pl.BlockSpec((1, 2, outer_nc), lambda i: (i, 0, 0)),
            ),
            scratch_shapes=[pltpu.VMEM(((ho + 2) * wo, 3 * inner_nc), jnp.bfloat16)],
        ),
        compiler_params=pltpu.CompilerParams(
            dimension_semantics=("parallel",),        # batch shards across v7x's 2 TCs (N>=2)
            vmem_limit_bytes=48 * 1024 * 1024,        # < v7x 64 MiB physical, headroom for scratch
        ),
    )(x_down, edge, wd, wu)


# -----------------------------------------------------------------------------
# Hoisted weight re-layout (done once, outside the forward / outside jit)
# -----------------------------------------------------------------------------
def prepare_params(down_w, up_w, bn_gamma, bn_beta):
    # Down conv: for each row offset ro, K-pack the 8 (a, b, co) taps; tap (r, s) =
    # (2*ro + a, 2*co + b) contributes the (cin, inner) matrix down_w[:, :, r, s].T.
    wd_rows = []
    for ro in range(2):
        blocks = []
        for a in range(2):
            for b in range(2):
                for co in range(2):
                    blocks.append(jnp.transpose(down_w[:, :, 2 * ro + a, 2 * co + b]))
        wd_rows.append(jnp.concatenate(blocks, axis=0))               # (8*cin, inner)
    wd = jnp.stack(wd_rows, axis=0)                                   # (2, 8*cin, inner)

    # Up conv: for output parity (a, b) and row slot t, stack the two kernel-column taps
    # along K in the same order as the scratch's column-offset chunks (chunk b, then b+1).
    wu_phases = []
    for a in range(2):
        for b in range(2):
            slots = []
            for t in range(2):
                kh = _KH[a][t]
                slots.append(jnp.concatenate([up_w[:, :, kh, _KW[b][0]],
                                              up_w[:, :, kh, _KW[b][1]]], axis=0))
            wu_phases.append(jnp.stack(slots, axis=0))                # (2, 2*inner, outer)
    wu = jnp.stack(wu_phases, axis=0)                                 # (4, 2, 2*inner, outer)

    return {
        "wd": wd.astype(jnp.bfloat16),      # bf16 MXU operands, f32 accumulation
        "wu": wu.astype(jnp.bfloat16),
        "gamma": bn_gamma.astype(jnp.float32),
        "beta": bn_beta.astype(jnp.float32),
    }


# -----------------------------------------------------------------------------
# Forward (NCHW in / NCHW out, matching the PyTorch module)
# -----------------------------------------------------------------------------
def unet_innermost_forward(x, prep, *, eps=1e-5):
    n, cin, h, w = x.shape
    assert h % 2 == 0 and w % 2 == 0
    ho, wo = h // 2, w // 2
    m = ho * wo
    inner_nc = prep["wd"].shape[-1]
    outer_nc = prep["wu"].shape[-1]

    # --- entry layout pass (one XLA fusion): bf16 cast + NCHW->NHWC + pad + tap packing ----
    xb = jnp.transpose(x.astype(jnp.bfloat16), (0, 2, 3, 1))
    xp = jnp.pad(xb, ((0, 0), (1, 1), (1, 1), (0, 0)))
    rows = []
    for ro in range(2):
        chunks = []
        for a in range(2):
            for b in range(2):
                for co in range(2):
                    chunks.append(xp[:, a + 2 * ro: a + 2 * ro + 2 * ho: 2,
                                     b + 2 * co: b + 2 * co + 2 * wo: 2, :])
        rows.append(jnp.concatenate(chunks, axis=-1).reshape(n, m, 8 * cin))
    x_down = jnp.stack(rows, axis=1)                                  # (n, 2, m, 8*cin) bf16

    # Column-edge keep masks for the shifted y chunks (tiny static constant).
    col = np.arange(m) % wo
    edge = jnp.asarray(np.stack([col != 0, col != wo - 1], axis=1).astype(np.float32),
                       dtype=jnp.bfloat16)                            # (m, 2)

    # --- fused kernel: LeakyReLU -> Conv -> ReLU -> ConvT (+ BN partial statistics) --------
    u, stats = unet_inner_core(x_down, edge, prep["wd"], prep["wu"],
                               ho=ho, wo=wo, inner_nc=inner_nc, outer_nc=outer_nc)

    # --- BatchNorm2d training-mode statistics: tiny O(C) reduction in plain JAX ------------
    # TODO(synk): switch to a shifted/Welford reduction for very large N*H*W; the biased
    #             E[u^2]-E[u]^2 variance is clamped at 0 to stay safe under cancellation.
    cnt = float(n * h * w)
    total = jnp.sum(stats, axis=0)                                    # (2, outer)
    mean = total[0] / cnt
    var = jnp.maximum(total[1] / cnt - mean * mean, 0.0)
    scale = prep["gamma"] * lax.rsqrt(var + eps)
    shift = prep["beta"] - mean * scale

    # --- exit pass (one XLA fusion): BN affine + phase interleave + NHWC->NCHW + concat ----
    # Folding the affine into the unavoidable layout/concat copy means u makes exactly one
    # HBM round trip after the kernel (no separate bn_apply kernel, no extra transpose trip).
    u_bn = u.astype(jnp.float32) * scale + shift                      # (n, 4, m, outer)
    u_bn = u_bn.reshape(n, 2, 2, ho, wo, outer_nc)                    # (n, a, b, oh, ow, c)
    u_nchw = u_bn.transpose(0, 5, 3, 1, 4, 2).reshape(n, outer_nc, h, w)
    return jnp.concatenate([x, u_nchw], axis=1)


# -----------------------------------------------------------------------------
# Pure-JAX reference (matches PyTorch semantics) for verification
# -----------------------------------------------------------------------------
def reference_forward(x, params):
    xl = jnp.where(x >= 0, x, 0.2 * x)
    y = lax.conv_general_dilated(xl, params["down_w"], window_strides=(2, 2),
                                 padding=((1, 1), (1, 1)),
                                 dimension_numbers=("NCHW", "OIHW", "NCHW"))
    y = jnp.maximum(y, 0.0)
    w_eq = jnp.flip(params["up_w"], axis=(2, 3)).transpose(1, 0, 2, 3)
    u = lax.conv_general_dilated(y, w_eq, window_strides=(1, 1),
                                 padding=((2, 2), (2, 2)), lhs_dilation=(2, 2),
                                 dimension_numbers=("NCHW", "OIHW", "NCHW"))
    mean = u.mean(axis=(0, 2, 3), keepdims=True)
    var = ((u - mean) ** 2).mean(axis=(0, 2, 3), keepdims=True)
    u_bn = ((u - mean) / jnp.sqrt(var + 1e-5)
            * params["bn_gamma"].reshape(1, -1, 1, 1)
            + params["bn_beta"].reshape(1, -1, 1, 1))
    return jnp.concatenate([x, u_bn], axis=1)


# -----------------------------------------------------------------------------
# Main
# -----------------------------------------------------------------------------
if __name__ == "__main__":
    key = jax.random.PRNGKey(0)
    k_x, k_dw, k_uw, k_g, k_b = jax.random.split(key, 5)

    N, H, W = 2, 16, 16
    outer_nc, inner_nc = 4, 8
    input_nc = outer_nc  # input_nc=None in __init__ -> input_nc = outer_nc

    x = jax.random.normal(k_x, (N, input_nc, H, W), dtype=jnp.float32)

    params = {
        # Conv2d(input_nc, inner_nc, 4, 4), bias=False (norm_layer is BatchNorm2d)
        "down_w": 0.05 * jax.random.normal(k_dw, (inner_nc, input_nc, 4, 4), dtype=jnp.float32),
        # ConvTranspose2d(inner_nc, outer_nc, 4, 4), bias=False
        "up_w": 0.05 * jax.random.normal(k_uw, (inner_nc, outer_nc, 4, 4), dtype=jnp.float32),
        # BatchNorm2d(outer_nc) affine params (perturbed from defaults to exercise the path)
        "bn_gamma": 1.0 + 0.1 * jax.random.normal(k_g, (outer_nc,), dtype=jnp.float32),
        "bn_beta": 0.1 * jax.random.normal(k_b, (outer_nc,), dtype=jnp.float32),
    }

    prep = prepare_params(params["down_w"], params["up_w"],
                          params["bn_gamma"], params["bn_beta"])

    fwd = jax.jit(unet_innermost_forward)
    out = jax.block_until_ready(fwd(x, prep))
    ref = jax.block_until_ready(reference_forward(x, params))

    assert out.shape == (N, input_nc + outer_nc, H, W), out.shape
    # Tolerance reflects the fully bf16 load/store path (input, y, u) with f32 MXU accumulation.
    np.testing.assert_allclose(np.asarray(out), np.asarray(ref), rtol=3e-2, atol=5e-2)

    print("KERNEL_OK")
</pallas_src>

<mosaic_0001>
module attributes {stable_mosaic.version = 11 : i64} {
  func.func @_unet_inner_core_kernel(%arg0: i32, %arg1: memref<1x2x64x32xbf16, #tpu.memory_space<vmem>>, %arg2: memref<64x2xbf16, #tpu.memory_space<vmem>>, %arg3: memref<2x32x8xbf16, #tpu.memory_space<vmem>>, %arg4: memref<4x2x16x4xbf16, #tpu.memory_space<vmem>>, %arg5: memref<1x4x64x4xbf16, #tpu.memory_space<vmem>>, %arg6: memref<1x2x4xf32, #tpu.memory_space<vmem>>, %arg7: memref<80x24xbf16, #tpu.memory_space<vmem>>) attributes {dimension_semantics = [#tpu.dimension_semantics<parallel>], iteration_bounds = array<i64: 2>, scalar_prefetch = 0 : i64, scratch_operands = 1 : i64, tpu.core_type = #tpu.core_type<tc>, window_params = [{transform_indices = @transform_0, window_bounds = array<i64: 1, 2, 64, 32>}, {pipeline_mode = #tpu.pipeline_mode<synchronous>, transform_indices = @transform_1, window_bounds = array<i64: 64, 2>}, {pipeline_mode = #tpu.pipeline_mode<synchronous>, transform_indices = @transform_2, window_bounds = array<i64: 2, 32, 8>}, {pipeline_mode = #tpu.pipeline_mode<synchronous>, transform_indices = @transform_3, window_bounds = array<i64: 4, 2, 16, 4>}, {transform_indices = @transform_4, window_bounds = array<i64: 1, 4, 64, 4>}, {transform_indices = @transform_5, window_bounds = array<i64: 1, 2, 4>}]} {
    %c0 = arith.constant 0 : index
    %c0_0 = arith.constant 0 : index
    %c0_1 = arith.constant 0 : index
    %c0_2 = arith.constant 0 : index
    %0 = vector.load %arg1[%c0, %c0_0, %c0_1, %c0_2] : memref<1x2x64x32xbf16, #tpu.memory_space<vmem>>, vector<1x1x64x32xbf16>
    %1 = vector.shape_cast %0 : vector<1x1x64x32xbf16> to vector<64x32xbf16>
    %c0_3 = arith.constant 0 : index
    %c1 = arith.constant 1 : index
    %c0_4 = arith.constant 0 : index
    %c0_5 = arith.constant 0 : index
    %2 = vector.load %arg1[%c0_3, %c1, %c0_4, %c0_5] : memref<1x2x64x32xbf16, #tpu.memory_space<vmem>>, vector<1x1x64x32xbf16>
    %3 = vector.shape_cast %2 : vector<1x1x64x32xbf16> to vector<64x32xbf16>
    %cst = arith.constant 0.000000e+00 : bf16
    %4 = vector.broadcast %cst : bf16 to vector<64x32xbf16>
    %5 = arith.cmpf oge, %1, %4 : vector<64x32xbf16>
    %cst_6 = arith.constant 2.001950e-01 : bf16
    %6 = vector.broadcast %cst_6 : bf16 to vector<64x32xbf16>
    %7 = arith.mulf %1, %6 : vector<64x32xbf16>
    %8 = arith.select %5, %1, %7 : vector<64x32xi1>, vector<64x32xbf16>
    %cst_7 = arith.constant 0.000000e+00 : bf16
    %9 = vector.broadcast %cst_7 : bf16 to vector<64x32xbf16>
    %10 = arith.cmpf oge, %3, %9 : vector<64x32xbf16>
    %cst_8 = arith.constant 2.001950e-01 : bf16
    %11 = vector.broadcast %cst_8 : bf16 to vector<64x32xbf16>
    %12 = arith.mulf %3, %11 : vector<64x32xbf16>
    %13 = arith.select %10, %3, %12 : vector<64x32xi1>, vector<64x32xbf16>
    %c0_9 = arith.constant 0 : index
    %c0_10 = arith.constant 0 : index
    %c0_11 = arith.constant 0 : index
    %14 = vector.load %arg3[%c0_9, %c0_10, %c0_11] : memref<2x32x8xbf16, #tpu.memory_space<vmem>>, vector<1x32x8xbf16>
    %15 = vector.shape_cast %14 : vector<1x32x8xbf16> to vector<32x8xbf16>
    %cst_12 = arith.constant dense<0.000000e+00> : vector<64x8xf32>
    %16 = tpu.matmul %8, %15, %cst_12 {dimension_numbers = #tpu.dot_dimension_numbers<[1], [0], [0], [1], [0, 0, 1, 1], [], []>} : vector<64x32xbf16>, vector<32x8xbf16>, vector<64x8xf32> -> vector<64x8xf32>
    %c1_13 = arith.constant 1 : index
    %c0_14 = arith.constant 0 : index
    %c0_15 = arith.constant 0 : index
    %17 = vector.load %arg3[%c1_13, %c0_14, %c0_15] : memref<2x32x8xbf16, #tpu.memory_space<vmem>>, vector<1x32x8xbf16>
    %18 = vector.shape_cast %17 : vector<1x32x8xbf16> to vector<32x8xbf16>
    %cst_16 = arith.constant dense<0.000000e+00> : vector<64x8xf32>
    %19 = tpu.matmul %13, %18, %cst_16 {dimension_numbers = #tpu.dot_dimension_numbers<[1], [0], [0], [1], [0, 0, 1, 1], [], []>} : vector<64x32xbf16>, vector<32x8xbf16>, vector<64x8xf32> -> vector<64x8xf32>
    %20 = arith.addf %16, %19 : vector<64x8xf32>
    %cst_17 = arith.constant 0.000000e+00 : f32
    %21 = vector.broadcast %cst_17 : f32 to vector<64x8xf32>
    %22 = arith.maximumf %20, %21 : vector<64x8xf32>
    %23 = arith.truncf %22 : vector<64x8xf32> to vector<64x8xbf16>
    %cst_18 = arith.constant 0.000000e+00 : bf16
    %24 = vector.broadcast %cst_18 : bf16 to vector<1x8xbf16>
    %25 = vector.extract_strided_slice %23 {offsets = [0, 0], sizes = [63, 8], strides = [1, 1]} : vector<64x8xbf16> to vector<63x8xbf16>
    %26 = tpu.concatenate %24, %25 in 0 : vector<1x8xbf16>, vector<63x8xbf16> -> vector<64x8xbf16>
    %27 = vector.extract_strided_slice %23 {offsets = [1, 0], sizes = [63, 8], strides = [1, 1]} : vector<64x8xbf16> to vector<63x8xbf16>
    %28 = tpu.concatenate %27, %24 in 0 : vector<63x8xbf16>, vector<1x8xbf16> -> vector<64x8xbf16>
    %c0_19 = arith.constant 0 : index
    %c0_20 = arith.constant 0 : index
    %29 = vector.load %arg2[%c0_19, %c0_20] : memref<64x2xbf16, #tpu.memory_space<vmem>>, vector<64x1xbf16>
    %c0_21 = arith.constant 0 : index
    %c1_22 = arith.constant 1 : index
    %30 = vector.load %arg2[%c0_21, %c1_22] : memref<64x2xbf16, #tpu.memory_space<vmem>>, vector<64x1xbf16>
    %cst_23 = arith.constant 0.000000e+00 : bf16
    %31 = vector.broadcast %cst_23 : bf16 to vector<8x24xbf16>
    %c0_24 = arith.constant 0 : index
    %c0_25 = arith.constant 0 : index
    %32 = vector.load %arg7[%c0_24, %c0_25] : memref<80x24xbf16, #tpu.memory_space<vmem>>, vector<8x24xbf16>
    tpu.vector_store %arg7[%c0_24, %c0_25], %31 {strides = array<i32>} : memref<80x24xbf16, #tpu.memory_space<vmem>>, vector<8x24xbf16>,
    %c72 = arith.constant 72 : index
    %c0_26 = arith.constant 0 : index
    %33 = vector.load %arg7[%c72, %c0_26] : memref<80x24xbf16, #tpu.memory_space<vmem>>, vector<8x24xbf16>
    tpu.vector_store %arg7[%c72, %c0_26], %31 {strides = array<i32>} : memref<80x24xbf16, #tpu.memory_space<vmem>>, vector<8x24xbf16>,
    %34 = vector.broadcast %29 : vector<64x1xbf16> to vector<64x8xbf16>
    %35 = arith.mulf %26, %34 : vector<64x8xbf16>
    %c8 = arith.constant 8 : index
    %c0_27 = arith.constant 0 : index
    %36 = vector.load %arg7[%c8, %c0_27] : memref<80x24xbf16, #tpu.memory_space<vmem>>, vector<64x8xbf16>
    tpu.vector_store %arg7[%c8, %c0_27], %35 {strides = array<i32>} : memref<80x24xbf16, #tpu.memory_space<vmem>>, vector<64x8xbf16>,
    %c8_28 = arith.constant 8 : index
    %c8_29 = arith.constant 8 : index
    %37 = vector.load %arg7[%c8_28, %c8_29] : memref<80x24xbf16, #tpu.memory_space<vmem>>, vector<64x8xbf16>
    tpu.vector_store %arg7[%c8_28, %c8_29], %23 {strides = array<i32>} : memref<80x24xbf16, #tpu.memory_space<vmem>>, vector<64x8xbf16>,
    %38 = vector.broadcast %30 : vector<64x1xbf16> to vector<64x8xbf16>
    %39 = arith.mulf %28, %38 : vector<64x8xbf16>
    %c8_30 = arith.constant 8 : index
    %c16 = arith.constant 16 : index
    %40 = vector.load %arg7[%c8_30, %c16] : memref<80x24xbf16, #tpu.memory_space<vmem>>, vector<64x8xbf16>
    tpu.vector_store %arg7[%c8_30, %c16], %39 {strides = array<i32>} : memref<80x24xbf16, #tpu.memory_space<vmem>>, vector<64x8xbf16>,
    %c0_31 = arith.constant 0 : index
    %c0_32 = arith.constant 0 : index
    %41 = vector.load %arg7[%c0_31, %c0_32] : memref<80x24xbf16, #tpu.memory_space<vmem>>, vector<64x16xbf16>
    %c8_33 = arith.constant 8 : index
    %c0_34 = arith.constant 0 : index
    %42 = vector.load %arg7[%c8_33, %c0_34] : memref<80x24xbf16, #tpu.memory_space<vmem>>, vector<64x16xbf16>
    %c0_35 = arith.constant 0 : index
    %c0_36 = arith.constant 0 : index
    %c0_37 = arith.constant 0 : index
    %c0_38 = arith.constant 0 : index
    %43 = vector.load %arg4[%c0_35, %c0_36, %c0_37, %c0_38] : memref<4x2x16x4xbf16, #tpu.memory_space<vmem>>, vector<1x1x16x4xbf16>
    %44 = vector.shape_cast %43 : vector<1x1x16x4xbf16> to vector<16x4xbf16>
    %cst_39 = arith.constant dense<0.000000e+00> : vector<64x4xf32>
    %45 = tpu.matmul %41, %44, %cst_39 {dimension_numbers = #tpu.dot_dimension_numbers<[1], [0], [0], [1], [0, 0, 1, 1], [], []>} : vector<64x16xbf16>, vector<16x4xbf16>, vector<64x4xf32> -> vector<64x4xf32>
    %c0_40 = arith.constant 0 : index
    %c1_41 = arith.constant 1 : index
    %c0_42 = arith.constant 0 : index
    %c0_43 = arith.constant 0 : index
    %46 = vector.load %arg4[%c0_40, %c1_41, %c0_42, %c0_43] : memref<4x2x16x4xbf16, #tpu.memory_space<vmem>>, vector<1x1x16x4xbf16>
    %47 = vector.shape_cast %46 : vector<1x1x16x4xbf16> to vector<16x4xbf16>
    %cst_44 = arith.constant dense<0.000000e+00> : vector<64x4xf32>
    %48 = tpu.matmul %42, %47, %cst_44 {dimension_numbers = #tpu.dot_dimension_numbers<[1], [0], [0], [1], [0, 0, 1, 1], [], []>} : vector<64x16xbf16>, vector<16x4xbf16>, vector<64x4xf32> -> vector<64x4xf32>
    %49 = arith.addf %45, %48 : vector<64x4xf32>
    %50 = arith.truncf %49 : vector<64x4xf32> to vector<64x4xbf16>
    %c0_45 = arith.constant 0 : index
    %c0_46 = arith.constant 0 : index
    %c0_47 = arith.constant 0 : index
    %c0_48 = arith.constant 0 : index
    %51 = vector.load %arg5[%c0_45, %c0_46, %c0_47, %c0_48] : memref<1x4x64x4xbf16, #tpu.memory_space<vmem>>, vector<1x1x64x4xbf16>
    %52 = vector.shape_cast %51 : vector<1x1x64x4xbf16> to vector<64x4xbf16>
    %53 = vector.shape_cast %50 : vector<64x4xbf16> to vector<1x1x64x4xbf16>
    tpu.vector_store %arg5[%c0_45, %c0_46, %c0_47, %c0_48], %53 {strides = array<i32>} : memref<1x4x64x4xbf16, #tpu.memory_space<vmem>>, vector<1x1x64x4xbf16>,
    %cst_49 = arith.constant dense<0.000000e+00> : vector<4xf32>
    %54 = vector.multi_reduction <add>, %49, %cst_49 [0] : vector<64x4xf32> to vector<4xf32>
    %55 = vector.shape_cast %54 : vector<4xf32> to vector<1x4xf32>
    %56 = arith.mulf %49, %49 : vector<64x4xf32>
    %cst_50 = arith.constant dense<0.000000e+00> : vector<4xf32>
    %57 = vector.multi_reduction <add>, %56, %cst_50 [0] : vector<64x4xf32> to vector<4xf32>
    %58 = vector.shape_cast %57 : vector<4xf32> to vector<1x4xf32>
    %c0_51 = arith.constant 0 : index
    %c8_52 = arith.constant 8 : index
    %59 = vector.load %arg7[%c0_51, %c8_52] : memref<80x24xbf16, #tpu.memory_space<vmem>>, vector<64x16xbf16>
    %c8_53 = arith.constant 8 : index
    %c8_54 = arith.constant 8 : index
    %60 = vector.load %arg7[%c8_53, %c8_54] : memref<80x24xbf16, #tpu.memory_space<vmem>>, vector<64x16xbf16>
    %c1_55 = arith.constant 1 : index
    %c0_56 = arith.constant 0 : index
    %c0_57 = arith.constant 0 : index
    %c0_58 = arith.constant 0 : index
    %61 = vector.load %arg4[%c1_55, %c0_56, %c0_57, %c0_58] : memref<4x2x16x4xbf16, #tpu.memory_space<vmem>>, vector<1x1x16x4xbf16>
    %62 = vector.shape_cast %61 : vector<1x1x16x4xbf16> to vector<16x4xbf16>
    %cst_59 = arith.constant dense<0.000000e+00> : vector<64x4xf32>
    %63 = tpu.matmul %59, %62, %cst_59 {dimension_numbers = #tpu.dot_dimension_numbers<[1], [0], [0], [1], [0, 0, 1, 1], [], []>} : vector<64x16xbf16>, vector<16x4xbf16>, vector<64x4xf32> -> vector<64x4xf32>
    %c1_60 = arith.constant 1 : index
    %c1_61 = arith.constant 1 : index
    %c0_62 = arith.constant 0 : index
    %c0_63 = arith.constant 0 : index
    %64 = vector.load %arg4[%c1_60, %c1_61, %c0_62, %c0_63] : memref<4x2x16x4xbf16, #tpu.memory_space<vmem>>, vector<1x1x16x4xbf16>
    %65 = vector.shape_cast %64 : vector<1x1x16x4xbf16> to vector<16x4xbf16>
    %cst_64 = arith.constant dense<0.000000e+00> : vector<64x4xf32>
    %66 = tpu.matmul %60, %65, %cst_64 {dimension_numbers = #tpu.dot_dimension_numbers<[1], [0], [0], [1], [0, 0, 1, 1], [], []>} : vector<64x16xbf16>, vector<16x4xbf16>, vector<64x4xf32> -> vector<64x4xf32>
    %67 = arith.addf %63, %66 : vector<64x4xf32>
    %68 = arith.truncf %67 : vector<64x4xf32> to vector<64x4xbf16>
    %c0_65 = arith.constant 0 : index
    %c1_66 = arith.constant 1 : index
    %c0_67 = arith.constant 0 : index
    %c0_68 = arith.constant 0 : index
    %69 = vector.load %arg5[%c0_65, %c1_66, %c0_67, %c0_68] : memref<1x4x64x4xbf16, #tpu.memory_space<vmem>>, vector<1x1x64x4xbf16>
    %70 = vector.shape_cast %69 : vector<1x1x64x4xbf16> to vector<64x4xbf16>
    %71 = vector.shape_cast %68 : vector<64x4xbf16> to vector<1x1x64x4xbf16>
    tpu.vector_store %arg5[%c0_65, %c1_66, %c0_67, %c0_68], %71 {strides = array<i32>} : memref<1x4x64x4xbf16, #tpu.memory_space<vmem>>, vector<1x1x64x4xbf16>,
    %cst_69 = arith.constant dense<0.000000e+00> : vector<4xf32>
    %72 = vector.multi_reduction <add>, %67, %cst_69 [0] : vector<64x4xf32> to vector<4xf32>
    %73 = vector.shape_cast %72 : vector<4xf32> to vector<1x4xf32>
    %74 = arith.mulf %67, %67 : vector<64x4xf32>
    %cst_70 = arith.constant dense<0.000000e+00> : vector<4xf32>
    %75 = vector.multi_reduction <add>, %74, %cst_70 [0] : vector<64x4xf32> to vector<4xf32>
    %76 = vector.shape_cast %75 : vector<4xf32> to vector<1x4xf32>
    %77 = arith.addf %55, %73 : vector<1x4xf32>
    %78 = arith.addf %58, %76 : vector<1x4xf32>
    %c8_71 = arith.constant 8 : index
    %c0_72 = arith.constant 0 : index
    %79 = vector.load %arg7[%c8_71, %c0_72] : memref<80x24xbf16, #tpu.memory_space<vmem>>, vector<64x16xbf16>
    %c16_73 = arith.constant 16 : index
    %c0_74 = arith.constant 0 : index
    %80 = vector.load %arg7[%c16_73, %c0_74] : memref<80x24xbf16, #tpu.memory_space<vmem>>, vector<64x16xbf16>
    %c2 = arith.constant 2 : index
    %c0_75 = arith.constant 0 : index
    %c0_76 = arith.constant 0 : index
    %c0_77 = arith.constant 0 : index
    %81 = vector.load %arg4[%c2, %c0_75, %c0_76, %c0_77] : memref<4x2x16x4xbf16, #tpu.memory_space<vmem>>, vector<1x1x16x4xbf16>
    %82 = vector.shape_cast %81 : vector<1x1x16x4xbf16> to vector<16x4xbf16>
    %cst_78 = arith.constant dense<0.000000e+00> : vector<64x4xf32>
    %83 = tpu.matmul %79, %82, %cst_78 {dimension_numbers = #tpu.dot_dimension_numbers<[1], [0], [0], [1], [0, 0, 1, 1], [], []>} : vector<64x16xbf16>, vector<16x4xbf16>, vector<64x4xf32> -> vector<64x4xf32>
    %c2_79 = arith.constant 2 : index
    %c1_80 = arith.constant 1 : index
    %c0_81 = arith.constant 0 : index
    %c0_82 = arith.constant 0 : index
    %84 = vector.load %arg4[%c2_79, %c1_80, %c0_81, %c0_82] : memref<4x2x16x4xbf16, #tpu.memory_space<vmem>>, vector<1x1x16x4xbf16>
    %85 = vector.shape_cast %84 : vector<1x1x16x4xbf16> to vector<16x4xbf16>
    %cst_83 = arith.constant dense<0.000000e+00> : vector<64x4xf32>
    %86 = tpu.matmul %80, %85, %cst_83 {dimension_numbers = #tpu.dot_dimension_numbers<[1], [0], [0], [1], [0, 0, 1, 1], [], []>} : vector<64x16xbf16>, vector<16x4xbf16>, vector<64x4xf32> -> vector<64x4xf32>
    %87 = arith.addf %83, %86 : vector<64x4xf32>
    %88 = arith.truncf %87 : vector<64x4xf32> to vector<64x4xbf16>
    %c0_84 = arith.constant 0 : index
    %c2_85 = arith.constant 2 : index
    %c0_86 = arith.constant 0 : index
    %c0_87 = arith.constant 0 : index
    %89 = vector.load %arg5[%c0_84, %c2_85, %c0_86, %c0_87] : memref<1x4x64x4xbf16, #tpu.memory_space<vmem>>, vector<1x1x64x4xbf16>
    %90 = vector.shape_cast %89 : vector<1x1x64x4xbf16> to vector<64x4xbf16>
    %91 = vector.shape_cast %88 : vector<64x4xbf16> to vector<1x1x64x4xbf16>
    tpu.vector_store %arg5[%c0_84, %c2_85, %c0_86, %c0_87], %91 {strides = array<i32>} : memref<1x4x64x4xbf16, #tpu.memory_space<vmem>>, vector<1x1x64x4xbf16>,
    %cst_88 = arith.constant dense<0.000000e+00> : vector<4xf32>
    %92 = vector.multi_reduction <add>, %87, %cst_88 [0] : vector<64x4xf32> to vector<4xf32>
    %93 = vector.shape_cast %92 : vector<4xf32> to vector<1x4xf32>
    %94 = arith.mulf %87, %87 : vector<64x4xf32>
    %cst_89 = arith.constant dense<0.000000e+00> : vector<4xf32>
    %95 = vector.multi_reduction <add>, %94, %cst_89 [0] : vector<64x4xf32> to vector<4xf32>
    %96 = vector.shape_cast %95 : vector<4xf32> to vector<1x4xf32>
    %97 = arith.addf %77, %93 : vector<1x4xf32>
    %98 = arith.addf %78, %96 : vector<1x4xf32>
    %c8_90 = arith.constant 8 : index
    %c8_91 = arith.constant 8 : index
    %99 = vector.load %arg7[%c8_90, %c8_91] : memref<80x24xbf16, #tpu.memory_space<vmem>>, vector<64x16xbf16>
    %c16_92 = arith.constant 16 : index
    %c8_93 = arith.constant 8 : index
    %100 = vector.load %arg7[%c16_92, %c8_93] : memref<80x24xbf16, #tpu.memory_space<vmem>>, vector<64x16xbf16>
    %c3 = arith.constant 3 : index
    %c0_94 = arith.constant 0 : index
    %c0_95 = arith.constant 0 : index
    %c0_96 = arith.constant 0 : index
    %101 = vector.load %arg4[%c3, %c0_94, %c0_95, %c0_96] : memref<4x2x16x4xbf16, #tpu.memory_space<vmem>>, vector<1x1x16x4xbf16>
    %102 = vector.shape_cast %101 : vector<1x1x16x4xbf16> to vector<16x4xbf16>
    %cst_97 = arith.constant dense<0.000000e+00> : vector<64x4xf32>
    %103 = tpu.matmul %99, %102, %cst_97 {dimension_numbers = #tpu.dot_dimension_numbers<[1], [0], [0], [1], [0, 0, 1, 1], [], []>} : vector<64x16xbf16>, vector<16x4xbf16>, vector<64x4xf32> -> vector<64x4xf32>
    %c3_98 = arith.constant 3 : index
    %c1_99 = arith.constant 1 : index
    %c0_100 = arith.constant 0 : index
    %c0_101 = arith.constant 0 : index
    %104 = vector.load %arg4[%c3_98, %c1_99, %c0_100, %c0_101] : memref<4x2x16x4xbf16, #tpu.memory_space<vmem>>, vector<1x1x16x4xbf16>
    %105 = vector.shape_cast %104 : vector<1x1x16x4xbf16> to vector<16x4xbf16>
    %cst_102 = arith.constant dense<0.000000e+00> : vector<64x4xf32>
    %106 = tpu.matmul %100, %105, %cst_102 {dimension_numbers = #tpu.dot_dimension_numbers<[1], [0], [0], [1], [0, 0, 1, 1], [], []>} : vector<64x16xbf16>, vector<16x4xbf16>, vector<64x4xf32> -> vector<64x4xf32>
    %107 = arith.addf %103, %106 : vector<64x4xf32>
    %108 = arith.truncf %107 : vector<64x4xf32> to vector<64x4xbf16>
    %c0_103 = arith.constant 0 : index
    %c3_104 = arith.constant 3 : index
    %c0_105 = arith.constant 0 : index
    %c0_106 = arith.constant 0 : index
    %109 = vector.load %arg5[%c0_103, %c3_104, %c0_105, %c0_106] : memref<1x4x64x4xbf16, #tpu.memory_space<vmem>>, vector<1x1x64x4xbf16>
    %110 = vector.shape_cast %109 : vector<1x1x64x4xbf16> to vector<64x4xbf16>
    %111 = vector.shape_cast %108 : vector<64x4xbf16> to vector<1x1x64x4xbf16>
    tpu.vector_store %arg5[%c0_103, %c3_104, %c0_105, %c0_106], %111 {strides = array<i32>} : memref<1x4x64x4xbf16, #tpu.memory_space<vmem>>, vector<1x1x64x4xbf16>,
    %cst_107 = arith.constant dense<0.000000e+00> : vector<4xf32>
    %112 = vector.multi_reduction <add>, %107, %cst_107 [0] : vector<64x4xf32> to vector<4xf32>
    %113 = vector.shape_cast %112 : vector<4xf32> to vector<1x4xf32>
    %114 = arith.mulf %107, %107 : vector<64x4xf32>
    %cst_108 = arith.constant dense<0.000000e+00> : vector<4xf32>
    %115 = vector.multi_reduction <add>, %114, %cst_108 [0] : vector<64x4xf32> to vector<4xf32>
    %116 = vector.shape_cast %115 : vector<4xf32> to vector<1x4xf32>
    %117 = arith.addf %97, %113 : vector<1x4xf32>
    %118 = arith.addf %98, %116 : vector<1x4xf32>
    %119 = tpu.concatenate %117, %118 in 0 : vector<1x4xf32>, vector<1x4xf32> -> vector<2x4xf32>
    %c0_109 = arith.constant 0 : index
    %c0_110 = arith.constant 0 : index
    %c0_111 = arith.constant 0 : index
    %120 = vector.load %arg6[%c0_109, %c0_110, %c0_111] : memref<1x2x4xf32, #tpu.memory_space<vmem>>, vector<1x2x4xf32>
    %121 = vector.shape_cast %120 : vector<1x2x4xf32> to vector<2x4xf32>
    %122 = vector.shape_cast %119 : vector<2x4xf32> to vector<1x2x4xf32>
    tpu.vector_store %arg6[%c0_109, %c0_110, %c0_111], %122 {strides = array<i32>} : memref<1x2x4xf32, #tpu.memory_space<vmem>>, vector<1x2x4xf32>,
    return
  }
  func.func @transform_0(%arg0: i32) -> (i32, i32, i32, i32) {
    %c0_i32 = arith.constant 0 : i32
    %c0_i32_0 = arith.constant 0 : i32
    %c0_i32_1 = arith.constant 0 : i32
    %c0_i32_2 = arith.constant 0 : i32
    return %arg0, %c0_i32, %c0_i32_0, %c0_i32_1 : i32, i32, i32, i32
  }
  func.func @transform_1(%arg0: i32) -> (i32, i32) {
    %c0_i32 = arith.constant 0 : i32
    %c0_i32_0 = arith.constant 0 : i32
    %c0_i32_1 = arith.constant 0 : i32
    return %c0_i32, %c0_i32_0 : i32, i32
  }
  func.func @transform_2(%arg0: i32) -> (i32, i32, i32) {
    %c0_i32 = arith.constant 0 : i32
    %c0_i32_0 = arith.constant 0 : i32
    %c0_i32_1 = arith.constant 0 : i32
    %c0_i32_2 = arith.constant 0 : i32
    return %c0_i32, %c0_i32_0, %c0_i32_1 : i32, i32, i32
  }
  func.func @transform_3(%arg0: i32) -> (i32, i32, i32, i32) {
    %c0_i32 = arith.constant 0 : i32
    %c0_i32_0 = arith.constant 0 : i32
    %c0_i32_1 = arith.constant 0 : i32
    %c0_i32_2 = arith.constant 0 : i32
    %c0_i32_3 = arith.constant 0 : i32
    return %c0_i32, %c0_i32_0, %c0_i32_1, %c0_i32_2 : i32, i32, i32, i32
  }
  func.func @transform_4(%arg0: i32) -> (i32, i32, i32, i32) {
    %c0_i32 = arith.constant 0 : i32
    %c0_i32_0 = arith.constant 0 : i32
    %c0_i32_1 = arith.constant 0 : i32
    %c0_i32_2 = arith.constant 0 : i32
    return %arg0, %c0_i32, %c0_i32_0, %c0_i32_1 : i32, i32, i32, i32
  }
  func.func @transform_5(%arg0: i32) -> (i32, i32, i32) {
    %c0_i32 = arith.constant 0 : i32
    %c0_i32_0 = arith.constant 0 : i32
    %c0_i32_1 = arith.constant 0 : i32
    return %arg0, %c0_i32, %c0_i32_0 : i32, i32, i32
  }
}

</mosaic_0001>

<bundles_post_ra>
// kernel: unet_innermost_forward.1
= control target key start
LH: loop header
LB: loop body
LE: loop exit
PB: predicated region body
PF: predicated region fallthrough
CT: control target
= control target key end

     0   :  { %s2248_s18 = smov 0   ;;  %s2810_s0 = inlined_call_operand.vmem [shape: bf16[2,2,64,32], index: 0, kind: input, shape index: {}]   ;;  %s2811_s1 = inlined_call_operand.vmem [shape: bf16[64,2], index: 1, kind: input, shape index: {}]   ;;  %s2812_s2 = inlined_call_operand.vmem [shape: bf16[2,32,8], index: 2, kind: input, shape index: {}]   ;;  %s2813_s3 = inlined_call_operand.vmem [shape: bf16[4,2,16,4], index: 3, kind: input, shape index: {}]   ;;  %s2814_s4 = inlined_call_operand.vmem [shape: bf16[2,4,64,4], index: 4, kind: output, shape index: {0}]   ;;  %s2815_s5 = inlined_call_operand.vmem [shape: f32[2,2,4], index: 5, kind: output, shape index: {1}]  }
   0x1 LB: > { %s1831_s19 = sadd.s32 4294967295, %s2210_s18   ;;  %p1835_p0 = scmp.ge.s32.totalorder %s2210_s18, 1  ;;  %s2210_s18 = sphi %s2248_s18, %s16_s18  }
   0x2   : > { %p190_p1 = scmp.lt.s32.totalorder %s2210_s18, 3 }
   0x4   : > { %p191_p2 = pnand %p1835_p0, %p190_p1 }
   0x5   : > { %p222_p3 = scmp.lt.s32.totalorder (!%p191_p2), %s1831_s19, 1  ;;  %s2214_s25 = smov (!%p191_p2), 8  }
   0x6   : > { %194 = sbr.rel (%p191_p2) target bundleno = 736 (0x2e0), region = 36  ;;  %s2216_s26 = smov (!%p191_p2), 16  }
   0xb   : > { %v1986_v0 = vld [vmem:[%s2812_s2 + $0x18] sm:$0xff]  ;;  %v1984_v1 = vld [vmem:[%s2812_s2 + $0x8] sm:$0xff]  ;;  %v2212_v2 = vmov 1   ;;  %v2266_v3 = vld [vmem:[%s2811_s1 + $0x4] sm:$0xf]  ;;  %s2845_s19 = smov (!%p222_p3, %s1831_s19), 1 }
   0xc   : > { %2198 = vset.pattern.permute.xlu1 %v2212_v2  ;;  %2197 = vset.pattern.permute.xlu0 %v2212_v2  ;;  %v1985_v4 = vld [vmem:[%s2812_s2 + $0x10] sm:$0xff]  ;;  %v1983_v5 = vld [vmem:[%s2812_s2] sm:$0xff]  ;;  %v2281_v6 = vld [vmem:[%s2811_s1 + $0x8] sm:$0xf]  ;;  %s1981_s7 = sshll.u32 %s2845_s19, 6  ;;  %vm391_vm6 = vcmask 261120  }
   0xd   : > { %410 = vmatpush.bf16.msra.mxu0 %v1986_v0  ;;  %483 = vmatpush.bf16.msra.mxu1 %v1984_v1  ;;  %s2289_s10 = scalar_lea.vmem %s2810_s0, %s1981_s7  ;;  %v2303_v18 = vld [vmem:[%s2811_s1] sm:$0xf]  ;;  %v2352_v50 = vld [vmem:[%s2811_s1 + $0x1c] sm:$0xf]  ;;  %v604_v57 = vld [vmem:[%s2811_s1 + $0x10] sm:$0xf] }
   0xe   : > { %766 = vperm.xlu1 %2198, %v2266_v3   ;;  %2199 = vset.pattern.permute.xlu2 %v2212_v2  ;;  %v1841_v7 = vld [vmem:[%s2289_s10 + $0x20] sm:$0xf]  ;;  %v1842_v8 = vld [vmem:[%s2289_s10 + $0x24] sm:$0xf]  ;;  %v2296_v14 = vld [vmem:[%s2289_s10 + $0x28] sm:$0xf] }
   0xf   : > { %774 = vperm.xlu0 %2197, %v2281_v6   ;;  %v237_v9 = vld [vmem:[%s2289_s10] sm:$0xf]  ;;  %v302_v10 = vunpack.c.l.bf16 %v1841_v7  ;;  %v303_v11 = vunpack.c.l.bf16 %v1842_v8  ;;  %v238_v12 = vld [vmem:[%s2289_s10 + $0x4] sm:$0xf]  ;;  %v1844_v16 = vld [vmem:[%s2289_s10 + $0x2c] sm:$0xf]  ;;  %v304_v17 = vunpack.c.l.bf16 %v2296_v14  ;;  %790 = vperm.xlu2 %2199, %v604_v57  }
  0x10   : > { %v254_v13 = vunpack.c.l.bf16 %v237_v9  ;;  %v255_v15 = vunpack.c.l.bf16 %v238_v12  ;;  %v239_v23 = vld [vmem:[%s2289_s10 + $0x8] sm:$0xf]  ;;  %v240_v28 = vld [vmem:[%s2289_s10 + $0xc] sm:$0xf]  ;;  %v305_v31 = vunpack.c.l.bf16 %v1844_v16  ;;  %v1845_v63 = vld [vmem:[%s2289_s10 + $0x30] sm:$0xf] }
  0x11   : > { %411 = vmatpush.bf16.msra.mxu0 %v1985_v4  ;;  %484 = vmatpush.bf16.msra.mxu1 %v1983_v5  ;;  %vm2305_vm0 = vcmp.ge.f32.partialorder %v302_v10, 0.0  ;;  %vm2309_vm1 = vcmp.ge.f32.partialorder %v303_v11, 0.0  ;;  %v318_v21 = vmul.f32 0.20019531, %v302_v10  ;;  %v319_v22 = vmul.f32 0.20019531, %v303_v11  ;;  %v603_v58 = vld [vmem:[%s2811_s1 + $0xc] sm:$0xf] }
  0x12   : > { %vm334_vm2 = vmpackc.low %vm2305_vm0, %vm2305_vm0  ;;  %vm2317_vm3 = vcmp.ge.f32.partialorder %v254_v13, 0.0  ;;  %vm2321_vm4 = vcmp.ge.f32.partialorder %v255_v15, 0.0  ;;  %v270_v26 = vmul.f32 0.20019531, %v254_v13  ;;  %v271_v27 = vmul.f32 0.20019531, %v255_v15  ;;  %v1846_v4 = vld [vmem:[%s2289_s10 + $0x34] sm:$0xf] }
  0x13   : > { %v326_v29 = vpack.c.bf16 %v318_v21, %v318_v21  ;;  %v327_v30 = vpack.c.bf16 %v319_v22, %v319_v22  ;;  %vm335_vm5 = vmpackc.low %vm2309_vm1, %vm2309_vm1  ;;  %vm2333_vm8 = vcmp.ge.f32.partialorder %v304_v17, 0.0  ;;  %v256_v37 = vunpack.c.l.bf16 %v239_v23  ;;  %v241_v5 = vld [vmem:[%s2289_s10 + $0x10] sm:$0xf]  ;;  %s1982_s21 = sshll.u32 %s2845_s19, 7 }
  0x14   : > { %v278_v32 = vpack.c.bf16 %v270_v26, %v270_v26  ;;  %v279_v33 = vpack.c.bf16 %v271_v27, %v271_v27  ;;  %vm286_vm7 = vmpackc.low %vm2317_vm3, %vm2317_vm3  ;;  %v257_v38 = vunpack.c.l.bf16 %v240_v28  ;;  %v320_v45 = vmul.f32 0.20019531, %v304_v17  ;;  %s2636_s24 = scalar_lea.vmem %s2814_s4, %s1982_s21 }
  0x15   : > { %v342_v35 = vsel %vm334_vm2, %v1841_v7, %v326_v29  ;;  %v343_v36 = vsel %vm335_vm5, %v1842_v8, %v327_v30  ;;  %vm287_vm9 = vmpackc.low %vm2321_vm4, %vm2321_vm4  ;;  %v321_v46 = vmul.f32 0.20019531, %v305_v31  ;;  %vm2345_vm10 = vcmp.ge.f32.partialorder %v305_v31, 0.0  ;;  %v242_v7 = vld [vmem:[%s2289_s10 + $0x14] sm:$0xf] }
  0x16   : > { %758 = vperm.xlu1 %2198, %v2303_v18   ;;  %v367_v39 = vunpack.c.l.b16 %v342_v35  ;;  %v368_v40 = vunpack.c.l.b16 %v343_v36  ;;  %v294_v41 = vsel %vm286_vm7, %v237_v9, %v278_v32  ;;  %v295_v42 = vsel %vm287_vm9, %v238_v12, %v279_v33  ;;  %vm336_vm12 = vmpackc.low %vm2333_vm8, %vm2333_vm8  ;;  %v2396_v9 = vld [vmem:[%s2811_s1 + $0x14] sm:$0xf]  ;;  %v2401_v12 = vld [vmem:[%s2811_s1 + $0x18] sm:$0xf] }
  0x17   : > { %v441_v43 = vunpack.c.l.b16 %v294_v41  ;;  %v442_v44 = vunpack.c.l.b16 %v295_v42  ;;  %v272_v49 = vmul.f32 0.20019531, %v256_v37  ;;  %vm2354_vm11 = vcmp.ge.f32.partialorder %v256_v37, 0.0  ;;  %vm337_vm14 = vmpackc.low %vm2345_vm10, %vm2345_vm10  ;;  %782 = vperm.xlu0 %2197, %v603_v58   ;;  %798 = vperm.xlu2 %2199, %v2396_v9   ;;  %v1847_v37 = vld [vmem:[%s2289_s10 + $0x38] sm:$0xf] }
  0x18   : > { %v375_v47 = vpack.c.b16 %v368_v40, %v367_v39  ;;  %v273_v53 = vmul.f32 0.20019531, %v257_v38  ;;  %vm2362_vm13 = vcmp.ge.f32.partialorder %v257_v38, 0.0  ;;  %v328_v55 = vpack.c.bf16 %v320_v45, %v320_v45  ;;  %vm288_vm15 = vmpackc.low %vm2354_vm11, %vm2354_vm11  ;;  %v1848_v38 = vld [vmem:[%s2289_s10 + $0x3c] sm:$0xf]  ;;  %v243_v39 = vld [vmem:[%s2289_s10 + $0x18] sm:$0xf] }
  0x19   : > { %v449_v51 = vpack.c.b16 %v442_v44, %v441_v43  ;;  %v329_v56 = vpack.c.bf16 %v321_v46, %v321_v46  ;;  %v280_v59 = vpack.c.bf16 %v272_v49, %v272_v49  ;;  %vm289_vm0 = vmpackc.low %vm2362_vm13, %vm2362_vm13  ;;  %vm608_vm1 = vcmask 191488   ;;  %v244_v40 = vld [vmem:[%s2289_s10 + $0x1c] sm:$0xf]  ;;  %s2217_s10 = smov 120  }
  0x1a   : > { %1861 = vmatmul.msk.bf16.vlgmr.msra.gmra.mxu0 %vm391_vm6, %v375_v47  ;;  %v281_v60 = vpack.c.bf16 %v273_v53, %v273_v53  ;;  %v344_v61 = vsel %vm336_vm12, %v2296_v14, %v328_v55  ;;  %v2213_v8 = vmov 0   ;;  %v306_v15 = vunpack.c.l.bf16 %v1845_v63 }
  0x1b   : > { %1873 = vmatmul.msk.bf16.vlgmr.msra.gmra.mxu1 %vm391_vm6, %v449_v51  ;;  %v345_v62 = vsel %vm337_vm14, %v1844_v16, %v329_v56  ;;  %v296_v0 = vsel %vm288_vm15, %v239_v23, %v280_v59  ;;  %609 = vst.msk [vmem:[#allocation2] sm:$0xf] %vm608_vm1, %v2213_v8  ;;  %v369_v10 = vunpack.c.l.b16 %v344_v61  ;;  %v307_v16 = vunpack.c.l.bf16 %v1846_v4 }
  0x1c   : > { %v297_v1 = vsel %vm289_vm0, %v240_v28, %v281_v60  ;;  %v370_v11 = vunpack.c.l.b16 %v345_v62  ;;  %610 = vst.msk [vmem:[#allocation2 + $0x24] sm:$0xf] %vm608_vm1, %v2213_v8  ;;  %v443_v13 = vunpack.c.l.b16 %v296_v0  ;;  %v258_v17 = vunpack.c.l.bf16 %v241_v5 }
  0x1d   : > { %v444_v14 = vunpack.c.l.b16 %v297_v1  ;;  %v259_v19 = vunpack.c.l.bf16 %v242_v7  ;;  %vm2406_vm2 = vcmp.ge.f32.partialorder %v306_v15, 0.0  ;;  %v322_v23 = vmul.f32 0.20019531, %v306_v15 }
  0x1e   : > { %814 = vperm.xlu1 %2198, %v2352_v50   ;;  %v376_v20 = vpack.c.b16 %v370_v11, %v369_v10  ;;  %v323_v24 = vmul.f32 0.20019531, %v307_v16  ;;  %vm2410_vm3 = vcmp.ge.f32.partialorder %v307_v16, 0.0  ;;  %v274_v26 = vmul.f32 0.20019531, %v258_v17  ;;  %vm338_vm5 = vmpackc.low %vm2406_vm2, %vm2406_vm2 }
  0x1f   : > { %806 = vperm.xlu0 %2197, %v2401_v12   ;;  %v450_v21 = vpack.c.b16 %v444_v14, %v443_v13  ;;  %v275_v27 = vmul.f32 0.20019531, %v259_v19  ;;  %vm2414_vm4 = vcmp.ge.f32.partialorder %v258_v17, 0.0  ;;  %vm2422_vm7 = vcmp.ge.f32.partialorder %v259_v19, 0.0  ;;  %vm339_vm8 = vmpackc.low %vm2410_vm3, %vm2410_vm3  ;;  %2200 = vset.pattern.permute.xlu2 %v2213_v8 }
  0x20   : > { %v330_v29 = vpack.c.bf16 %v322_v23, %v322_v23  ;;  %v331_v30 = vpack.c.bf16 %v323_v24, %v323_v24  ;;  %v282_v31 = vpack.c.bf16 %v274_v26, %v274_v26  ;;  %vm290_vm9 = vmpackc.low %vm2414_vm4, %vm2414_vm4  ;;  %631 = vperm.xlu2 %2200, %v2281_v6   ;;  %v308_v45 = vunpack.c.l.bf16 %v1847_v37 }
  0x21   : > { %v283_v32 = vpack.c.bf16 %v275_v27, %v275_v27  ;;  %vm291_vm10 = vmpackc.low %vm2422_vm7, %vm2422_vm7  ;;  %v309_v46 = vunpack.c.l.bf16 %v1848_v38  ;;  %v260_v47 = vunpack.c.l.bf16 %v243_v39  ;;  %v261_v48 = vunpack.c.l.bf16 %v244_v40 }
  0x22   : > { %v346_v33 = vsel %vm338_vm5, %v1845_v63, %v330_v29  ;;  %v347_v34 = vsel %vm339_vm8, %v1846_v4, %v331_v30  ;;  %v298_v35 = vsel %vm290_vm9, %v241_v5, %v282_v31  ;;  %vm2442_vm11 = vcmp.ge.f32.partialorder %v308_v45, 0.0 }
  0x23   : > { %v299_v36 = vsel %vm291_vm10, %v242_v7, %v283_v32  ;;  %v371_v41 = vunpack.c.l.b16 %v346_v33  ;;  %v372_v42 = vunpack.c.l.b16 %v347_v34  ;;  %v445_v43 = vunpack.c.l.b16 %v298_v35  ;;  %vm340_vm14 = vmpackc.low %vm2442_vm11, %vm2442_vm11 }
  0x24   : > { %v446_v44 = vunpack.c.l.b16 %v299_v36  ;;  %v324_v52 = vmul.f32 0.20019531, %v308_v45  ;;  %v325_v53 = vmul.f32 0.20019531, %v309_v46  ;;  %vm2446_vm12 = vcmp.ge.f32.partialorder %v309_v46, 0.0 }
  0x25   : > { %v377_v6 = vpack.c.b16 %v372_v42, %v371_v41  ;;  %v276_v55 = vmul.f32 0.20019531, %v260_v47  ;;  %v277_v56 = vmul.f32 0.20019531, %v261_v48  ;;  %vm268_vm13 = vcmp.ge.f32.partialorder %v260_v47, 0.0  ;;  %vm341_vm0 = vmpackc.low %vm2446_vm12, %vm2446_vm12 }
  0x26   : > { %2202 = vset.pattern.permute.xlu1 %v2213_v8  ;;  %v451_v49 = vpack.c.b16 %v446_v44, %v445_v43  ;;  %vm269_vm15 = vcmp.ge.f32.partialorder %v261_v48, 0.0  ;;  %vm292_vm1 = vmpackc.low %vm268_vm13, %vm268_vm13  ;;  %vm578_vm3 = vcmask 1040384   ;;  %vm715_vm5 = vcmask 60416  }
  0x27   : > { %622 = vperm.xlu1 %2202, %v2266_v3   ;;  %2201 = vset.pattern.permute.xlu0 %v2213_v8  ;;  %v285_v59 = vpack.c.bf16 %v277_v56, %v277_v56  ;;  %vm293_vm2 = vmpackc.low %vm269_vm15, %vm269_vm15  ;;  %v2215_v3 = vmov 839922192   ;;  %vm581_vm7 = vsmask.f32 7424  ;;  %vm597_vm8 = vcmask 1047552  }
  0x28   : > { %640 = vperm.xlu0 %2201, %v603_v58   ;;  %613 = vperm.xlu2 %2200, %v2303_v18   ;;  %v332_v18 = vpack.c.bf16 %v324_v52, %v324_v52  ;;  %v284_v58 = vpack.c.bf16 %v276_v55, %v276_v55  ;;  %v617_v28 = vunpack.c.l.s4 %v2215_v3  ;;  %vm598_vm9 = vmand %vm597_vm8, %vm581_vm7  ;;  %vm748_vm10 = vcmask 126016  }
  0x29   : > { %v301_v63 = vsel %vm293_vm2, %v244_v40, %v285_v59  ;;  %vm885_vm11 = vcmask 191616   ;;  %vm934_vm12 = vcmask 130048   ;;  %vm1037_vm13 = vcmask 27648  }
  0x2a   : > { %1862 = vmatmul.msk.bf16.gmra.mxu0 %vm391_vm6, %v376_v20  ;;  %v348_v60 = vsel %vm340_vm14, %v1847_v37, %v332_v18  ;;  %v300_v62 = vsel %vm292_vm1, %v243_v39, %v284_v58  ;;  %v448_v5 = vunpack.c.l.b16 %v301_v63  ;;  %v2478_v34 = vunpack.c.0.s8 %v617_v28 }
  0x2b   : > { %1874 = vmatmul.msk.bf16.gmra.mxu1 %vm391_vm6, %v450_v21  ;;  %v373_v0 = vunpack.c.l.b16 %v348_v60  ;;  %v447_v4 = vunpack.c.l.b16 %v300_v62  ;;  %vm1046_vm14 = vcmask 31744   ;;  %vm1743_vm15 = vcmask 25600  }
  0x2d   : > { %v452_v8 = vpack.c.b16 %v448_v5, %v447_v4 }
  0x2f   : > { %649 = vperm.xlu1 %2202, %v604_v57   ;;  %v333_v57 = vpack.c.bf16 %v325_v53, %v325_v53 }
  0x31   : > { %v349_v61 = vsel %vm341_vm0, %v1848_v38, %v333_v57 }
  0x32   : > { %v374_v1 = vunpack.c.l.b16 %v349_v61 }
  0x34   : > { %v378_v7 = vpack.c.b16 %v374_v1, %v373_v0 }
  0x3a   : > { %1863 = vmatmul.msk.bf16.gmra.mxu0 %vm391_vm6, %v377_v6 }
  0x3b   : > { %1875 = vmatmul.msk.bf16.gmra.mxu1 %vm391_vm6, %v451_v49 }
  0x4a   : > { %1864 = vmatmul.msk.bf16.gmra.mxu0 %vm391_vm6, %v378_v7 }
  0x4b   : > { %1876 = vmatmul.msk.bf16.gmra.mxu1 %vm391_vm6, %v452_v8  ;;  %vm542_vm6 = vsmask.f32 256 }
  0x4c   : > { %vm579_vm4 = vmand %vm578_vm3, %vm542_vm6 }
  0x69   : > { %v2460_v10 = vpop.permute.xlu2 %790 }
  0x71   : > { %v2464_v13 = vpop.permute.xlu2 %798 }
  0x7a   : > { %v2470_v22 = vpop.permute.xlu2 %631 }
  0x80   : > { %v2462_v11 = vpop.permute.xlu1 %766 }
  0x81   : > { %v2468_v20 = vpop.permute.xlu0 %774  ;;  %v772_v8 = vperm.slane %v2462_v11, %v2478_v34 }
  0x82   : > { %v614_v38 = vpop.permute.xlu2 %613 }
  0x83   : > { %v619_v42 = vperm.slane %v614_v38, %v2478_v34 }
  0x85   : > { %v691_v49 = vunpack.c.l.bf16 %v619_v42 }
  0x88   : > { %v2466_v14 = vpop.permute.xlu1 %758 }
  0x89   : > { %v2475_v30 = vpop.permute.xlu0 %782 }
  0x90   : > { %v2473_v24 = vpop.permute.xlu1 %814 }
  0x91   : > { %v2485_v6 = vpop.permute.xlu0 %806 }
  0x97   : > { %v413_v15 = vpop.f32.mrf.mxu0 }
  0x98   : > { %v486_v16 = vpop.f32.mrf.mxu1 }
  0x99   : > { %v487_v17 = vadd.f32 %v486_v16, %v413_v15  ;;  %v623_v39 = vpop.permute.xlu1 %622 }
  0x9a   : > { %v628_v43 = vperm.slane %v623_v39, %v2478_v34  ;;  %v641_v7 = vpop.permute.xlu0 %640 }
  0x9b   : > { %v506_v19 = vmax.f32 %v487_v17, 0.0 }
  0x9c   : > { %v692_v51 = vunpack.c.l.bf16 %v628_v43 }
  0x9d   : > { %v514_v21 = vpack.c.bf16 %v506_v19, %v506_v19  ;;  %v637_v19 = vperm.slane %v2470_v22, %v2478_v34 }
  0x9f   : > { %724 = vrot.lane.b32.xlu0 %v514_v21, %s2214_s25  ;;  %v415_v23 = vpop.f32.mrf.mxu0  ;;  %v530_v31 = vunpack.c.l.b16 %v514_v21  ;;  %v646_v21 = vperm.slane %v641_v7, %v2478_v34 }
  0xa0   : > { %v488_v25 = vpop.f32.mrf.mxu1 }
  0xa1   : > { %v489_v26 = vadd.f32 %v488_v25, %v415_v23 }
  0xa3   : > { %v507_v27 = vmax.f32 %v489_v26, 0.0 }
  0xa5   : > { %v515_v29 = vpack.c.bf16 %v507_v27, %v507_v27  ;;  %v830_v27 = vunpack.c.l.bf16 %v772_v8 }
  0xa7   : > { %v531_v32 = vunpack.c.l.b16 %v515_v29  ;;  %726 = vrot.lane.b32.xlu2 %v515_v29, %s2214_s25  ;;  %v418_v33 = vpop.f32.mrf.mxu0 }
  0xa8   : > { %v491_v35 = vpop.f32.mrf.mxu1 }
  0xa9   : > { %v538_v36 = vpack.c.b16 %v531_v32, %v530_v31  ;;  %v492_v37 = vadd.f32 %v491_v35, %v418_v33  ;;  %v693_v31 = vunpack.c.l.bf16 %v637_v19  ;;  %v694_v32 = vunpack.c.l.bf16 %v646_v21 }
  0xab   : > { %v544_v40 = vshrl.u32 %v538_v36, 16  ;;  %v508_v41 = vmax.f32 %v492_v37, 0.0  ;;  %v547_v45 = vshll.u32 %v538_v36, 16 }
  0xad   : > { %v546_v44 = vrot.slane %v544_v40, 7  ;;  %v516_v46 = vpack.c.bf16 %v508_v41, %v508_v41  ;;  %v582_v4 = vrot.slane %v547_v45, 1 }
  0xaf   : > { %v549_v47 = vor.u32 %v547_v45, %v546_v44  ;;  %728 = vrot.lane.b32.xlu1 %v516_v46, %s2214_s25  ;;  %v420_v48 = vpop.f32.mrf.mxu0  ;;  %v532_v62 = vunpack.c.l.b16 %v516_v46  ;;  %v583_v23 = vor.u32 %v582_v4, %v544_v40 }
  0xb0   : > { %v493_v52 = vpop.f32.mrf.mxu1 }
  0xb1   : > { %v580_v53 = vsel %vm579_vm4, 0, %v549_v47  ;;  %v494_v54 = vadd.f32 %v493_v52, %v420_v48 }
  0xb2   : > { %v683_v55 = vunpack.c.l.bf16 %v580_v53  ;;  %v684_v56 = vunpack.c.h.bf16 %v580_v53 }
  0xb3   : > { %v509_v18 = vmax.f32 %v494_v54, 0.0  ;;  %v650_v54 = vpop.permute.xlu1 %649 }
  0xb4   : > { %v699_v57 = vmul.f32 %v691_v49, %v683_v55  ;;  %v700_v58 = vmul.f32 %v692_v51, %v684_v56  ;;  %v780_v55 = vperm.slane %v2468_v20, %v2478_v34 }
  0xb5   : > { %v517_v59 = vpack.c.bf16 %v509_v18, %v509_v18 }
  0xb6   : > { %v707_v60 = vpack.c.bf16 %v699_v57, %v699_v57  ;;  %v708_v61 = vpack.c.bf16 %v700_v58, %v700_v58  ;;  %v788_v57 = vperm.slane %v2475_v30, %v2478_v34  ;;  %v655_v58 = vperm.slane %v650_v54, %v2478_v34 }
  0xb7   : > { %v533_v63 = vunpack.c.l.b16 %v517_v59  ;;  %730 = vrot.lane.b32.xlu2 %v517_v59, %s2214_s25  ;;  %v423_v0 = vpop.f32.mrf.mxu0 }
  0xb8   : > { %v496_v1 = vpop.f32.mrf.mxu1  ;;  %717 = vst.msk [vmem:[#allocation2 + $0x8] sm:$0xf] %vm715_vm5, %v708_v61  ;;  %v832_v20 = vunpack.c.l.bf16 %v788_v57  ;;  %v695_v7 = vunpack.c.l.bf16 %v655_v58 }
  0xb9   : > { %v539_v5 = vpack.c.b16 %v533_v63, %v532_v62  ;;  %716 = vst.msk [vmem:[#allocation2 + $0x4] sm:$0xf] %vm715_vm5, %v707_v60  ;;  %v497_v17 = vadd.f32 %v496_v1, %v423_v0  ;;  %v764_v63 = vperm.slane %v2466_v14, %v2478_v34  ;;  %v831_v0 = vunpack.c.l.bf16 %v780_v55 }
  0xba   : > { %v820_v55 = vperm.slane %v2473_v24, %v2478_v34 }
  0xbb   : > { %v551_v15 = vshrl.u32 %v539_v5, 16  ;;  %v554_v16 = vshll.u32 %v539_v5, 16  ;;  %v510_v28 = vmax.f32 %v497_v17, 0.0  ;;  %v829_v14 = vunpack.c.l.bf16 %v764_v63 }
  0xbc   : > { %v836_v58 = vunpack.c.l.bf16 %v820_v55  ;;  %v1990_v55 = vld [vmem:[%s2813_s3 + $0x18] sm:$0xff] }
  0xbd   : > { %v553_v25 = vrot.slane %v551_v15, 7  ;;  %v584_v26 = vrot.slane %v554_v16, 1  ;;  %v518_v40 = vpack.c.bf16 %v510_v28, %v510_v28 }
  0xbf   : > { %v556_v3 = vor.u32 %v554_v16, %v553_v25  ;;  %658 = vperm.xlu2 %2200, %v2396_v9   ;;  %v425_v29 = vpop.f32.mrf.mxu0  ;;  %v2497_v11 = vsel %vm581_vm7, %v583_v23, %v584_v26  ;;  %v534_v48 = vunpack.c.l.b16 %v518_v40  ;;  %v586_v59 = vor.u32 %v584_v26, %v551_v15 }
  0xc0   : > { %v498_v33 = vpop.f32.mrf.mxu1  ;;  %v822_v22 = vunpack.c.h.bf16 %v2497_v11 }
  0xc1   : > { %v557_v35 = vsel %vm542_vm6, %v546_v44, %v556_v3  ;;  %v499_v36 = vadd.f32 %v498_v33, %v425_v29 }
  0xc2   : > { %v685_v37 = vunpack.c.l.bf16 %v557_v35  ;;  %v686_v38 = vunpack.c.h.bf16 %v557_v35  ;;  %v838_v39 = vmul.f32 %v830_v27, %v822_v22 }
  0xc3   : > { %v511_v41 = vmax.f32 %v499_v36, 0.0 }
  0xc4   : > { %v702_v42 = vmul.f32 %v694_v32, %v686_v38  ;;  %v846_v43 = vpack.c.bf16 %v838_v39, %v838_v39  ;;  %v701_v9 = vmul.f32 %v693_v31, %v685_v37  ;;  %v821_v31 = vunpack.c.l.bf16 %v2497_v11 }
  0xc5   : > { %v2501_v45 = vpack.c.bf16 %v511_v41, %v511_v41  ;;  %v796_v37 = vperm.slane %v2460_v10, %v2478_v34  ;;  %v804_v38 = vperm.slane %v2464_v13, %v2478_v34 }
  0xc6   : > { %v710_v46 = vpack.c.bf16 %v702_v42, %v702_v42  ;;  %863 = vrot.lane.b32.xlu0 %v846_v43, %s2216_s26  ;;  %v709_v47 = vpack.c.bf16 %v701_v9, %v701_v9  ;;  %v837_v35 = vmul.f32 %v829_v14, %v821_v31 }
  0xc7   : > { %v535_v49 = vunpack.c.l.b16 %v2501_v45  ;;  %732 = vrot.lane.b32.xlu2 %v518_v40, %s2214_s25  ;;  %v428_v44 = vpop.f32.mrf.mxu0  ;;  %v833_v9 = vunpack.c.l.bf16 %v796_v37 }
  0xc8   : > { %v501_v51 = vpop.f32.mrf.mxu1  ;;  %719 = vst.msk [vmem:[#allocation2 + $0x10] sm:$0xf] %vm715_vm5, %v710_v46  ;;  %v845_v40 = vpack.c.bf16 %v837_v35, %v837_v35  ;;  %v834_v46 = vunpack.c.l.bf16 %v804_v38 }
  0xc9   : > { %v540_v52 = vpack.c.b16 %v535_v49, %v534_v48  ;;  %v502_v53 = vadd.f32 %v501_v51, %v428_v44  ;;  %718 = vst.msk [vmem:[#allocation2 + $0xc] sm:$0xf] %vm715_vm5, %v709_v47 }
  0xcb   : > { %v559_v56 = vshrl.u32 %v540_v52, 16  ;;  %v562_v18 = vshll.u32 %v540_v52, 16  ;;  %v512_v62 = vmax.f32 %v502_v53, 0.0 }
  0xcd   : > { %v561_v60 = vrot.slane %v559_v56, 7  ;;  %v587_v61 = vrot.slane %v562_v18, 1  ;;  %v520_v30 = vpack.c.bf16 %v512_v62, %v512_v62 }
  0xcf   : > { %v564_v1 = vor.u32 %v562_v18, %v561_v60  ;;  %v430_v4 = vpop.f32.mrf.mxu0  ;;  %v588_v5 = vsel %vm581_vm7, %v586_v59, %v587_v61  ;;  %v536_v32 = vunpack.c.l.b16 %v520_v30  ;;  %v589_v41 = vor.u32 %v587_v61, %v559_v56 }
  0xd0   : > { %v503_v8 = vpop.f32.mrf.mxu1  ;;  %v824_v16 = vunpack.c.h.bf16 %v588_v5  ;;  %v823_v17 = vunpack.c.l.bf16 %v588_v5  ;;  %v812_v56 = vperm.slane %v2485_v6, %v2478_v34 }
  0xd1   : > { %v2517_v19 = vsel %vm542_vm6, %v553_v25, %v564_v1  ;;  %v504_v15 = vadd.f32 %v503_v8, %v430_v4  ;;  %v1987_v8 = vld [vmem:[%s2813_s3] sm:$0xff] }
  0xd2   : > { %v687_v21 = vunpack.c.l.bf16 %v2517_v19  ;;  %v840_v23 = vmul.f32 %v832_v20, %v824_v16  ;;  %v839_v26 = vmul.f32 %v831_v0, %v823_v17  ;;  %v835_v59 = vunpack.c.l.bf16 %v812_v56  ;;  %v1988_v16 = vld [vmem:[%s2813_s3 + $0x8] sm:$0xff]  ;;  %2166 = vmatpush.bf16.msra.mxu3 %v1987_v8  ;;  %1007 = vmatpush.bf16.msrb.mxu1 %v1987_v8  ;;  %v1989_v56 = vld [vmem:[%s2813_s3 + $0x10] sm:$0xff] }
  0xd3   : > { %v513_v27 = vmax.f32 %v504_v15, 0.0  ;;  %v688_v0 = vunpack.c.h.bf16 %v2517_v19  ;;  %2165 = vmatpush.bf16.msra.mxu2 %v1988_v16  ;;  %954 = vmatpush.bf16.msrb.mxu0 %v1988_v16  ;;  %v1992_v19 = vld [vmem:[%s2813_s3 + $0x28] sm:$0xff] }
  0xd4   : > { %v703_v3 = vmul.f32 %v695_v7, %v687_v21  ;;  %v848_v28 = vpack.c.bf16 %v840_v23, %v840_v23  ;;  %v847_v29 = vpack.c.bf16 %v839_v26, %v839_v26 }
  0xd5   : > { %v521_v33 = vpack.c.bf16 %v513_v27, %v513_v27 }
  0xd6   : > { %v711_v22 = vpack.c.bf16 %v703_v3, %v703_v3  ;;  %867 = vrot.lane.b32.xlu1 %v848_v28, %s2216_s26  ;;  %865 = vrot.lane.b32.xlu0 %v847_v29, %s2216_s26 }
  0xd7   : > { %v537_v25 = vunpack.c.l.b16 %v521_v33  ;;  %1377 = vmatpush.bf16.msra.mxu0 %v1992_v19  ;;  %1165 = vmatpush.bf16.msrb.mxu2 %v1990_v55 }
  0xd8   : > { %720 = vst.msk [vmem:[#allocation2 + $0x14] sm:$0xf] %vm715_vm5, %v711_v22  ;;  %1226 = vmatpush.bf16.msrb.mxu3 %v1989_v56 }
  0xd9   : > { %v541_v36 = vpack.c.b16 %v537_v25, %v536_v32 }
  0xdb   : > { %v567_v39 = vshrl.u32 %v541_v36, 16  ;;  %v570_v11 = vshll.u32 %v541_v36, 16 }
  0xdd   : > { %v569_v42 = vrot.slane %v567_v39, 7  ;;  %v590_v43 = vrot.slane %v570_v11, 1 }
  0xde   : > { %734 = vrot.lane.b32.xlu0 %v2501_v45, %s2214_s25  ;;  %861 = vrot.lane.b32.xlu1 %v845_v40, %s2216_s26 }
  0xdf   : > { %v572_v47 = vor.u32 %v570_v11, %v569_v42  ;;  %v591_v48 = vsel %vm581_vm7, %v589_v41, %v590_v43  ;;  %v592_v54 = vor.u32 %v590_v43, %v567_v39 }
  0xe0   : > { %v826_v10 = vunpack.c.h.bf16 %v591_v48  ;;  %v825_v49 = vunpack.c.l.bf16 %v591_v48 }
  0xe1   : > { %v2533_v13 = vsel %vm542_vm6, %v561_v60, %v572_v47  ;;  %v599_v45 = vsel %vm598_vm9, %v592_v54, 0 }
  0xe2   : > { %v842_v44 = vmul.f32 %v834_v46, %v826_v10  ;;  %v841_v51 = vmul.f32 %v833_v9, %v825_v49  ;;  %v828_v18 = vunpack.c.h.bf16 %v599_v45  ;;  %v827_v57 = vunpack.c.l.bf16 %v599_v45 }
  0xe3   : > { %v689_v35 = vunpack.c.l.bf16 %v2533_v13  ;;  %v690_v9 = vunpack.c.h.bf16 %v2533_v13 }
  0xe4   : > { %v850_v52 = vpack.c.bf16 %v842_v44, %v842_v44  ;;  %v849_v53 = vpack.c.bf16 %v841_v51, %v841_v51  ;;  %v843_v60 = vmul.f32 %v835_v59, %v827_v57 }
  0xe6   : > { %871 = vrot.lane.b32.xlu2 %v850_v52, %s2216_s26  ;;  %667 = vperm.xlu0 %2201, %v2401_v12   ;;  %v844_v12 = vmul.f32 %v836_v58, %v828_v18  ;;  %v851_v62 = vpack.c.bf16 %v843_v60, %v843_v60  ;;  %v1994_v60 = vld [vmem:[%s2813_s3 + $0x38] sm:$0xff] }
  0xe7   : > { %869 = vrot.lane.b32.xlu1 %v849_v53, %s2216_s26 }
  0xe8   : > { %v852_v61 = vpack.c.bf16 %v844_v12, %v844_v12 }
  0xee   : > { %736 = vrot.lane.b32.xlu2 %v520_v30, %s2214_s25  ;;  %738 = vrot.lane.b32.xlu0 %v521_v33, %s2214_s25  ;;  %v1991_v30 = vld [vmem:[%s2813_s3 + $0x20] sm:$0xff]  ;;  %s1840_s25 = sshll.u32 %s2845_s19, 1 }
  0xef   : > { %676 = vperm.xlu1 %2202, %v2352_v50   ;;  %2203 = vset.pattern.permute.xlu0 %v2212_v2  ;;  %s235_s28 = scalar_lea.vmem %s2815_s5, %s1840_s25 }
  0xf0   : > { %1430 = vmatpush.bf16.msra.mxu1 %v1991_v30 }
  0xf6   : > { %875 = vrot.lane.b32.xlu2 %v852_v61, %s2216_s26  ;;  %v1993_v61 = vld [vmem:[%s2813_s3 + $0x30] sm:$0xff] }
  0xf7   : > { %873 = vrot.lane.b32.xlu1 %v851_v62, %s2216_s26 }
 0x101   : > { %v727_v24 = vpop.permute.xlu2 %726 }
 0x102   : > { %750 = vst.msk [vmem:[#allocation2 + $0x8] sm:$0xf] %vm748_vm10, %v727_v24 }
 0x111   : > { %v731_v6 = vpop.permute.xlu2 %730  ;;  %v725_v63 = vpop.permute.xlu0 %724 }
 0x112   : > { %752 = vst.msk [vmem:[#allocation2 + $0x10] sm:$0xf] %vm748_vm10, %v731_v6 }
 0x113   : > { %749 = vst.msk [vmem:[#allocation2 + $0x4] sm:$0xf] %vm748_vm10, %v725_v63 }
 0x119   : > { %v659_v50 = vpop.permute.xlu2 %658 }
 0x11a   : > { %v664_v2 = vperm.slane %v659_v50, %v2478_v34 }
 0x11c   : > { %v696_v1 = vunpack.c.l.bf16 %v664_v2 }
 0x11e   : > { %v704_v4 = vmul.f32 %v696_v1, %v688_v0 }
 0x120   : > { %v712_v5 = vpack.c.bf16 %v704_v4, %v704_v4 }
 0x121   : > { %v729_v20 = vpop.permute.xlu1 %728  ;;  %v733_v7 = vpop.permute.xlu2 %732 }
 0x122   : > { %721 = vst.msk [vmem:[#allocation2 + $0x18] sm:$0xf] %vm715_vm5, %v712_v5 }
 0x123   : > { %751 = vst.msk [vmem:[#allocation2 + $0xc] sm:$0xf] %vm748_vm10, %v729_v20 }
 0x124   : > { %753 = vst.msk [vmem:[#allocation2 + $0x14] sm:$0xf] %vm748_vm10, %v733_v7 }
 0x138   : > { %v864_v17 = vpop.permute.xlu0 %863 }
 0x139   : > { %887 = vst.msk [vmem:[#allocation2 + $0x8] sm:$0xf] %vm885_vm11, %v864_v17 }
 0x140   : > { %v872_v28 = vpop.permute.xlu2 %871 }
 0x148   : > { %v868_v15 = vpop.permute.xlu1 %867  ;;  %v866_v21 = vpop.permute.xlu0 %865 }
 0x149   : > { %889 = vst.msk [vmem:[#allocation2 + $0x10] sm:$0xf] %vm885_vm11, %v868_v15  ;;  %v737_v39 = vpop.permute.xlu2 %736 }
 0x14a   : > { %888 = vst.msk [vmem:[#allocation2 + $0xc] sm:$0xf] %vm885_vm11, %v866_v21 }
 0x150   : > { %v862_v23 = vpop.permute.xlu1 %861  ;;  %v735_v26 = vpop.permute.xlu0 %734 }
 0x151   : > { %886 = vst.msk [vmem:[#allocation2 + $0x4] sm:$0xf] %vm885_vm11, %v862_v23  ;;  %v2059_v14 = vld [vmem:[#allocation2 + $0x8] sm:$0xff]   ;;  %v876_v44 = vpop.permute.xlu2 %875 }
 0x152   : > { %v2179_v27 = vld [vmem:[#allocation2 + $0xc] sm:$0xff]   ;;  %754 = vst.msk [vmem:[#allocation2 + $0x18] sm:$0xf] %vm748_vm10, %v735_v26  ;;  %1892 = vmatmul.msk.bf16.vlgmr.msra.gmra.mxu3 %vm934_vm12, %v2059_v14 }
 0x153   : > { %v2171_v3 = vld [vmem:[#allocation2 + $0xc] sm:$0xff]   ;;  %891 = vst.msk [vmem:[#allocation2 + $0x18] sm:$0xf] %vm885_vm11, %v872_v28  ;;  %1134 = vrot.lane.b32.xlu2 %v2179_v27, %s2217_s10  ;;  %1650 = vmatpush.bf16.msra.mxu3 %v1993_v61 }
 0x154   : > { %1884 = vmatmul.msk.bf16.vlgmr.msra.gmra.mxu2 %vm934_vm12, %v2171_v3  ;;  %v2161_v13 = vld [vmem:[#allocation2 + $0xc] sm:$0xff]  }
 0x155   : > { %v2154_v54 = vld [vmem:[#allocation2 + $0xc] sm:$0xff]   ;;  %1589 = vmatpush.bf16.msra.mxu2 %v1994_v60 }
 0x158   : > { %v2012_v29 = vld [vmem:[#allocation2] sm:$0xff]   ;;  %v668_v33 = vpop.permute.xlu0 %667 }
 0x159   : > { %v2177_v31 = vld [vmem:[#allocation2 + $0x4] sm:$0xff]   ;;  %v870_v22 = vpop.permute.xlu1 %869  ;;  %1193 = vrot.lane.b32.xlu1 %v2012_v29, %s2217_s10  ;;  %1891 = vmatmul.msk.bf16.vlgmr.msrb.gmra.mxu1 %vm934_vm12, %v2012_v29  ;;  %v673_v25 = vperm.slane %v668_v33, %v2478_v34 }
 0x15a   : > { %v2169_v32 = vld [vmem:[#allocation2 + $0x4] sm:$0xff]   ;;  %890 = vst.msk [vmem:[#allocation2 + $0x14] sm:$0xf] %vm885_vm11, %v870_v22  ;;  %1132 = vrot.lane.b32.xlu0 %v2177_v31, %s2217_s10 }
 0x15b   : > { %1883 = vmatmul.msk.bf16.vlgmr.msrb.gmra.mxu0 %vm934_vm12, %v2169_v32  ;;  %v697_v36 = vunpack.c.l.bf16 %v673_v25  ;;  %v2152_v48 = vld [vmem:[#allocation2 + $0x4] sm:$0xff]  }
 0x15c   : > { %v2159_v18 = vld [vmem:[#allocation2 + $0x4] sm:$0xff]  }
 0x15d   : > { %v705_v37 = vmul.f32 %v697_v36, %v689_v35 }
 0x15f   : > { %v713_v38 = vpack.c.bf16 %v705_v37, %v705_v37 }
 0x161   : > { %v677_v11 = vpop.permute.xlu1 %676  ;;  %v2063_v40 = vld [vmem:[#allocation2 + $0x10] sm:$0xff]   ;;  %722 = vst.msk [vmem:[#allocation2 + $0x1c] sm:$0xf] %vm715_vm5, %v713_v38 }
 0x162   : > { %v2173_v41 = vld [vmem:[#allocation2 + $0x14] sm:$0xff]   ;;  %v682_v43 = vperm.slane %v677_v11, %v2478_v34  ;;  %1197 = vrot.lane.b32.xlu2 %v2063_v40, %s2217_s10  ;;  %1893 = vmatmul.msk.bf16.gmra.mxu3 %vm934_vm12, %v2063_v40  ;;  %755 = vst.msk [vmem:[#allocation2 + $0x1c] sm:$0xf] %vm748_vm10, %v737_v39  ;;  %v739_v34 = vpop.permute.xlu0 %738 }
 0x163   : > { %v2181_v42 = vld [vmem:[#allocation2 + $0x14] sm:$0xff]   ;;  %1195 = vrot.lane.b32.xlu0 %v2059_v14, %s2217_s10 }
 0x164   : > { %1885 = vmatmul.msk.bf16.gmra.mxu2 %vm934_vm12, %v2173_v41  ;;  %v698_v46 = vunpack.c.l.bf16 %v682_v43  ;;  %1136 = vrot.lane.b32.xlu1 %v2181_v42, %s2217_s10  ;;  %v2163_v57 = vld [vmem:[#allocation2 + $0x14] sm:$0xff]  }
 0x165   : > { %v2156_v58 = vld [vmem:[#allocation2 + $0x14] sm:$0xff]  }
 0x166   : > { %v706_v47 = vmul.f32 %v698_v46, %v690_v9 }
 0x168   : > { %v714_v10 = vpack.c.bf16 %v706_v47, %v706_v47 }
 0x169   : > { %1939 = vmatmul.msk.bf16.vlgmr.msra.gmra.mxu1 %vm934_vm12, %v2152_v48  ;;  %v874_v49 = vpop.permute.xlu1 %873 }
 0x16a   : > { %723 = vst.msk [vmem:[#allocation2 + $0x20] sm:$0xf] %vm715_vm5, %v714_v10  ;;  %1556 = vrot.lane.b32.xlu2 %v2059_v14, %s2217_s10 }
 0x16b   : > { %1931 = vmatmul.msk.bf16.vlgmr.msra.gmra.mxu0 %vm934_vm12, %v2059_v14  ;;  %756 = vst.msk [vmem:[#allocation2 + $0x20] sm:$0xf] %vm748_vm10, %v739_v34 }
 0x16c   : > { %893 = vst.msk [vmem:[#allocation2 + $0x20] sm:$0xf] %vm885_vm11, %v876_v44 }
 0x16d   : > { %892 = vst.msk [vmem:[#allocation2 + $0x1c] sm:$0xf] %vm885_vm11, %v874_v49 }
 0x172   : > { %1619 = vrot.lane.b32.xlu2 %v2161_v13, %s2217_s10 }
 0x173   : > { %v2091_v45 = vld [vmem:[#allocation2 + $0x20] sm:$0xff]  }
 0x174   : > { %v2061_v51 = vld [vmem:[#allocation2 + $0x18] sm:$0xff]  }
 0x175   : > { %v2174_v52 = vld [vmem:[#allocation2 + $0x1c] sm:$0xff]  ;;  %1894 = vmatmul.msk.bf16.gmra.mxu3 %vm934_vm12, %v2061_v51  ;;  %1199 = vrot.lane.b32.xlu1 %v2061_v51, %s2217_s10 }
 0x176   : > { %v2182_v53 = vld [vmem:[#allocation2 + $0x1c] sm:$0xff]  ;;  %1886 = vmatmul.msk.bf16.gmra.mxu2 %vm934_vm12, %v2174_v52 }
 0x177   : > { %1138 = vrot.lane.b32.xlu0 %v2182_v53, %s2217_s10  ;;  %v2164_v59 = vld [vmem:[#allocation2 + $0x1c] sm:$0xff]  }
 0x178   : > { %v2157_v12 = vld [vmem:[#allocation2 + $0x1c] sm:$0xff]  }
 0x179   : > { %1940 = vmatmul.msk.bf16.gmra.mxu1 %vm934_vm12, %v2154_v54 }
 0x17a   : > { %1562 = vrot.lane.b32.xlu2 %v2091_v45, %s2217_s10 }
 0x17b   : > { %1932 = vmatmul.msk.bf16.gmra.mxu0 %vm934_vm12, %v2063_v40 }
 0x17d   : > { %1558 = vrot.lane.b32.xlu1 %v2063_v40, %s2217_s10 }
 0x17f   : > { %1617 = vrot.lane.b32.xlu0 %v2159_v18, %s2217_s10 }
 0x185   : > { %1621 = vrot.lane.b32.xlu1 %v2163_v57, %s2217_s10 }
 0x187   : > { %1560 = vrot.lane.b32.xlu0 %v2061_v51, %s2217_s10 }
 0x189   : > { %1941 = vmatmul.msk.bf16.gmra.mxu1 %vm934_vm12, %v2156_v58 }
 0x18b   : > { %1933 = vmatmul.msk.bf16.gmra.mxu0 %vm934_vm12, %v2061_v51 }
 0x18f   : > { %1623 = vrot.lane.b32.xlu0 %v2164_v59, %s2217_s10 }
 0x199   : > { %1942 = vmatmul.msk.bf16.gmra.mxu1 %vm934_vm12, %v2157_v12 }
 0x19b   : > { %1934 = vmatmul.msk.bf16.gmra.mxu0 %vm934_vm12, %v2091_v45 }
 0x1ad   : > { %v1135_v7 = vpop.permute.xlu2 %1134 }
 0x1bc   : > { %v1198_v44 = vpop.permute.xlu2 %1197 }
 0x1cb   : > { %v1194_v62 = vpop.permute.xlu1 %1193 }
 0x1cc   : > { %1911 = vmatmul.msk.bf16.vlgmr.msrb.gmra.mxu3 %vm934_vm12, %v1194_v62  ;;  %v1133_v24 = vpop.permute.xlu0 %1132 }
 0x1cd   : > { %1903 = vmatmul.msk.bf16.vlgmr.msrb.gmra.mxu2 %vm934_vm12, %v1133_v24 }
 0x1d5   : > { %v1014_v6 = vpop.f32.mrf.mxu3  ;;  %v1196_v20 = vpop.permute.xlu0 %1195 }
 0x1d6   : > { %v1009_v2 = vpop.f32.mrf.mxu1  ;;  %v1137_v51 = vpop.permute.xlu1 %1136 }
 0x1d7   : > { %v961_v63 = vpop.f32.mrf.mxu2 }
 0x1d8   : > { %v1015_v50 = vadd.f32 %v1014_v6, %v961_v63  ;;  %v956_v0 = vpop.f32.mrf.mxu0 }
 0x1d9   : > { %v1010_v1 = vadd.f32 %v1009_v2, %v956_v0 }
 0x1da   : > { %v1031_v4 = vpack.c.bf16 %v1015_v50, %v1015_v50  ;;  %v1070_v23 = vmul.f32 %v1015_v50, %v1015_v50  ;;  %v1050_v31 = vsel %vm1046_vm14, %v1015_v50, 0.0 }
 0x1db   : > { %v1029_v5 = vpack.c.bf16 %v1010_v1, %v1010_v1  ;;  %v1068_v15 = vmul.f32 %v1010_v1, %v1010_v1  ;;  %v1047_v14 = vsel %vm1046_vm14, %v1010_v1, 0.0 }
 0x1dc   : > { %1040 = vst.msk [vmem:[%s2636_s24 + $0x8] sm:$0xf] %vm1037_vm13, %v1031_v4  ;;  %1912 = vmatmul.msk.bf16.gmra.mxu3 %vm934_vm12, %v1196_v20  ;;  %v1079_v37 = vsel %vm1046_vm14, %v1070_v23, 0.0 }
 0x1dd   : > { %1038 = vst.msk [vmem:[%s2636_s24] sm:$0xf] %vm1037_vm13, %v1029_v5  ;;  %v1016_v8 = vpop.f32.mrf.mxu3  ;;  %1904 = vmatmul.msk.bf16.gmra.mxu2 %vm934_vm12, %v1135_v7  ;;  %v1076_v32 = vsel %vm1046_vm14, %v1068_v15, 0.0 }
 0x1de   : > { %v1011_v30 = vpop.f32.mrf.mxu1 }
 0x1df   : > { %v963_v16 = vpop.f32.mrf.mxu2 }
 0x1e0   : > { %v1017_v17 = vadd.f32 %v1016_v8, %v963_v16  ;;  %v958_v19 = vpop.f32.mrf.mxu0 }
 0x1e1   : > { %v1012_v21 = vadd.f32 %v1011_v30, %v958_v19 }
 0x1e2   : > { %v1032_v26 = vpack.c.bf16 %v1017_v17, %v1017_v17  ;;  %v1071_v33 = vmul.f32 %v1017_v17, %v1017_v17  ;;  %v1052_v38 = vsel %vm1046_vm14, %v1017_v17, 0.0 }
 0x1e3   : > { %v1030_v27 = vpack.c.bf16 %v1012_v21, %v1012_v21  ;;  %v1048_v3 = vsel %vm1046_vm14, %v1012_v21, 0.0  ;;  %v1069_v28 = vmul.f32 %v1012_v21, %v1012_v21 }
 0x1e4   : > { %1041 = vst.msk [vmem:[%s2636_s24 + $0xc] sm:$0xf] %vm1037_vm13, %v1032_v26  ;;  %v1049_v29 = vadd.f32 %v1048_v3, %v1047_v14  ;;  %v1081_v43 = vsel %vm1046_vm14, %v1071_v33, 0.0 }
 0x1e5   : > { %1039 = vst.msk [vmem:[%s2636_s24 + $0x4] sm:$0xf] %vm1037_vm13, %v1030_v27  ;;  %v1077_v22 = vsel %vm1046_vm14, %v1069_v28, 0.0  ;;  %v1019_v36 = vpop.f32.mrf.mxu3 }
 0x1e6   : > { %v1051_v25 = vadd.f32 %v1050_v31, %v1049_v29  ;;  %v1078_v35 = vadd.f32 %v1077_v22, %v1076_v32  ;;  %v1432_v42 = vpop.f32.mrf.mxu1 }
 0x1e7   : > { %v966_v39 = vpop.f32.mrf.mxu2  ;;  %v1200_v19 = vpop.permute.xlu1 %1199 }
 0x1e8   : > { %v1080_v11 = vadd.f32 %v1079_v37, %v1078_v35  ;;  %v1020_v40 = vadd.f32 %v1019_v36, %v966_v39  ;;  %v1053_v41 = vadd.f32 %v1052_v38, %v1051_v25  ;;  %v1379_v9 = vpop.f32.mrf.mxu0 }
 0x1e9   : > { %v1433_v49 = vadd.f32 %v1432_v42, %v1379_v9  ;;  %v1139_v15 = vpop.permute.xlu0 %1138 }
 0x1ea   : > { %v1033_v46 = vpack.c.bf16 %v1020_v40, %v1020_v40  ;;  %v1054_v47 = vsel %vm1046_vm14, %v1020_v40, 0.0  ;;  %v1072_v48 = vmul.f32 %v1020_v40, %v1020_v40  ;;  %v1082_v10 = vadd.f32 %v1081_v43, %v1080_v11 }
 0x1eb   : > { %v1055_v34 = vadd.f32 %v1054_v47, %v1053_v41  ;;  %v1452_v53 = vpack.c.bf16 %v1433_v49, %v1433_v49  ;;  %v1490_v18 = vmul.f32 %v1433_v49, %v1433_v49  ;;  %v1469_v61 = vsel %vm1046_vm14, %v1433_v49, 0.0 }
 0x1ec   : > { %1042 = vst.msk [vmem:[%s2636_s24 + $0x10] sm:$0xf] %vm1037_vm13, %v1033_v46  ;;  %v1083_v13 = vsel %vm1046_vm14, %v1072_v48, 0.0  ;;  %1913 = vmatmul.msk.bf16.gmra.mxu3 %vm934_vm12, %v1198_v44 }
 0x1ed   : > { %v1084_v52 = vadd.f32 %v1083_v13, %v1082_v10  ;;  %v1021_v54 = vpop.f32.mrf.mxu3  ;;  %1905 = vmatmul.msk.bf16.gmra.mxu2 %vm934_vm12, %v1137_v51  ;;  %1943 = vst.msk [vmem:[%s2636_s24 + $0x40] sm:$0xf] %vm1037_vm13, %v1452_v53  ;;  %v1498_v1 = vsel %vm1046_vm14, %v1490_v18, 0.0  ;;  %v1557_v53 = vpop.permute.xlu2 %1556 }
 0x1ee   : > { %v1434_v56 = vpop.f32.mrf.mxu1 }
 0x1ef   : > { %v968_v45 = vpop.f32.mrf.mxu2 }
 0x1f0   : > { %v1022_v55 = vadd.f32 %v1021_v54, %v968_v45  ;;  %v1381_v57 = vpop.f32.mrf.mxu0 }
 0x1f1   : > { %v1435_v60 = vadd.f32 %v1434_v56, %v1381_v57 }
 0x1f2   : > { %v1034_v58 = vpack.c.bf16 %v1022_v55, %v1022_v55  ;;  %v1056_v59 = vsel %vm1046_vm14, %v1022_v55, 0.0  ;;  %v1073_v12 = vmul.f32 %v1022_v55, %v1022_v55 }
 0x1f3   : > { %v1057_v62 = vadd.f32 %v1056_v59, %v1055_v34  ;;  %v1453_v6 = vpack.c.bf16 %v1435_v60, %v1435_v60  ;;  %v1470_v63 = vsel %vm1046_vm14, %v1435_v60, 0.0  ;;  %v1491_v50 = vmul.f32 %v1435_v60, %v1435_v60 }
 0x1f4   : > { %1043 = vst.msk [vmem:[%s2636_s24 + $0x14] sm:$0xf] %vm1037_vm13, %v1034_v58  ;;  %v1085_v24 = vsel %vm1046_vm14, %v1073_v12, 0.0  ;;  %v1471_v0 = vadd.f32 %v1470_v63, %v1469_v61 }
 0x1f5   : > { %v1086_v2 = vadd.f32 %v1085_v24, %v1084_v52  ;;  %1944 = vst.msk [vmem:[%s2636_s24 + $0x44] sm:$0xf] %vm1037_vm13, %v1453_v6  ;;  %v1499_v4 = vsel %vm1046_vm14, %v1491_v50, 0.0  ;;  %v1618_v52 = vpop.permute.xlu0 %1617 }
 0x1f6   : > { %v1500_v5 = vadd.f32 %v1499_v4, %v1498_v1  ;;  %v1437_v20 = vpop.f32.mrf.mxu1  ;;  %v1620_v1 = vpop.permute.xlu2 %1619 }
 0x1f7   : > { %v1559_v4 = vpop.permute.xlu1 %1558 }
 0x1f8   : > { %v1024_v7 = vpop.f32.mrf.mxu3  ;;  %v1384_v16 = vpop.f32.mrf.mxu0 }
 0x1f9   : > { %v971_v8 = vpop.f32.mrf.mxu2  ;;  %v1438_v30 = vadd.f32 %v1437_v20, %v1384_v16 }
 0x1fa   : > { %v1025_v17 = vadd.f32 %v1024_v7, %v971_v8 }
 0x1fb   : > { %v1454_v14 = vpack.c.bf16 %v1438_v30, %v1438_v30  ;;  %v1472_v3 = vsel %vm1046_vm14, %v1438_v30, 0.0  ;;  %v1492_v28 = vmul.f32 %v1438_v30, %v1438_v30 }
 0x1fc   : > { %v1035_v21 = vpack.c.bf16 %v1025_v17, %v1025_v17  ;;  %v1058_v23 = vsel %vm1046_vm14, %v1025_v17, 0.0  ;;  %v1074_v26 = vmul.f32 %v1025_v17, %v1025_v17  ;;  %1914 = vmatmul.msk.bf16.gmra.mxu3 %vm934_vm12, %v1200_v19  ;;  %v1473_v31 = vadd.f32 %v1472_v3, %v1471_v0 }
 0x1fd   : > { %v1059_v27 = vadd.f32 %v1058_v23, %v1057_v62  ;;  %1906 = vmatmul.msk.bf16.gmra.mxu2 %vm934_vm12, %v1139_v15  ;;  %1945 = vst.msk [vmem:[%s2636_s24 + $0x48] sm:$0xf] %vm1037_vm13, %v1454_v14  ;;  %v1501_v33 = vsel %vm1046_vm14, %v1492_v28, 0.0 }
 0x1fe   : > { %1044 = vst.msk [vmem:[%s2636_s24 + $0x18] sm:$0xf] %vm1037_vm13, %v1035_v21  ;;  %v1087_v29 = vsel %vm1046_vm14, %v1074_v26, 0.0  ;;  %v1439_v22 = vpop.f32.mrf.mxu1  ;;  %v1502_v25 = vadd.f32 %v1501_v33, %v1500_v5 }
 0x1ff   : > { %v1088_v32 = vadd.f32 %v1087_v29, %v1086_v2  ;;  %v1622_v28 = vpop.permute.xlu1 %1621  ;;  %v1561_v29 = vpop.permute.xlu0 %1560 }
 0x200   : > { %v1026_v35 = vpop.f32.mrf.mxu3  ;;  %v1386_v37 = vpop.f32.mrf.mxu0 }
 0x201   : > { %v973_v36 = vpop.f32.mrf.mxu2  ;;  %v1440_v39 = vadd.f32 %v1439_v22, %v1386_v37 }
 0x202   : > { %v1027_v38 = vadd.f32 %v1026_v35, %v973_v36 }
 0x203   : > { %v1455_v42 = vpack.c.bf16 %v1440_v39, %v1440_v39  ;;  %v1474_v9 = vsel %vm1046_vm14, %v1440_v39, 0.0  ;;  %v1493_v46 = vmul.f32 %v1440_v39, %v1440_v39 }
 0x204   : > { %v1036_v11 = vpack.c.bf16 %v1027_v38, %v1027_v38  ;;  %v1060_v40 = vsel %vm1046_vm14, %v1027_v38, 0.0  ;;  %v1075_v41 = vmul.f32 %v1027_v38, %v1027_v38  ;;  %v1475_v48 = vadd.f32 %v1474_v9, %v1473_v31 }
 0x205   : > { %v2685_v43 = vadd.f32 %v1060_v40, %v1059_v27  ;;  %1946 = vst.msk [vmem:[%s2636_s24 + $0x4c] sm:$0xf] %vm1037_vm13, %v1455_v42  ;;  %v1503_v34 = vsel %vm1046_vm14, %v1493_v46, 0.0 }
 0x206   : > { %1045 = vst.msk [vmem:[%s2636_s24 + $0x1c] sm:$0xf] %vm1037_vm13, %v1036_v11  ;;  %v1089_v47 = vsel %vm1046_vm14, %v1075_v41, 0.0  ;;  %v1442_v49 = vpop.f32.mrf.mxu1  ;;  %v1504_v44 = vadd.f32 %v1503_v34, %v1502_v25 }
 0x207   : > { %v2691_v10 = vadd.f32 %v1089_v47, %v1088_v32  ;;  %v1624_v31 = vpop.permute.xlu0 %1623  ;;  %v1563_v32 = vpop.permute.xlu2 %1562 }
 0x208   : > { %v1389_v13 = vpop.f32.mrf.mxu0 }
 0x209   : > { %v1443_v51 = vadd.f32 %v1442_v49, %v1389_v13 }
 0x20b   : > { %v1456_v54 = vpack.c.bf16 %v1443_v51, %v1443_v51  ;;  %v1476_v45 = vsel %vm1046_vm14, %v1443_v51, 0.0  ;;  %v1494_v55 = vmul.f32 %v1443_v51, %v1443_v51 }
 0x20c   : > { %1967 = vmatmul.msk.bf16.vlgmr.msra.gmra.mxu3 %vm934_vm12, %v1618_v52  ;;  %v1477_v56 = vadd.f32 %v1476_v45, %v1475_v48 }
 0x20d   : > { %1959 = vmatmul.msk.bf16.vlgmr.msra.gmra.mxu2 %vm934_vm12, %v1557_v53  ;;  %1947 = vst.msk [vmem:[%s2636_s24 + $0x50] sm:$0xf] %vm1037_vm13, %v1456_v54  ;;  %v1505_v18 = vsel %vm1046_vm14, %v1494_v55, 0.0 }
 0x20e   : > { %v1506_v57 = vadd.f32 %v1505_v18, %v1504_v44  ;;  %v1444_v58 = vpop.f32.mrf.mxu1 }
 0x210   : > { %v1391_v59 = vpop.f32.mrf.mxu0 }
 0x211   : > { %v1445_v12 = vadd.f32 %v1444_v58, %v1391_v59 }
 0x213   : > { %v1457_v60 = vpack.c.bf16 %v1445_v12, %v1445_v12  ;;  %v1478_v61 = vsel %vm1046_vm14, %v1445_v12, 0.0  ;;  %v1495_v62 = vmul.f32 %v1445_v12, %v1445_v12 }
 0x214   : > { %v1479_v24 = vadd.f32 %v1478_v61, %v1477_v56 }
 0x215   : > { %1948 = vst.msk [vmem:[%s2636_s24 + $0x54] sm:$0xf] %vm1037_vm13, %v1457_v60  ;;  %v1507_v6 = vsel %vm1046_vm14, %v1495_v62, 0.0 }
 0x216   : > { %v1508_v63 = vadd.f32 %v1507_v6, %v1506_v57  ;;  %v1447_v50 = vpop.f32.mrf.mxu1 }
 0x218   : > { %v1394_v2 = vpop.f32.mrf.mxu0 }
 0x219   : > { %v1448_v0 = vadd.f32 %v1447_v50, %v1394_v2 }
 0x21b   : > { %v1458_v5 = vpack.c.bf16 %v1448_v0, %v1448_v0  ;;  %v1480_v20 = vsel %vm1046_vm14, %v1448_v0, 0.0  ;;  %v1496_v7 = vmul.f32 %v1448_v0, %v1448_v0 }
 0x21c   : > { %1968 = vmatmul.msk.bf16.gmra.mxu3 %vm934_vm12, %v1620_v1  ;;  %v1481_v8 = vadd.f32 %v1480_v20, %v1479_v24 }
 0x21d   : > { %1960 = vmatmul.msk.bf16.gmra.mxu2 %vm934_vm12, %v1559_v4  ;;  %1949 = vst.msk [vmem:[%s2636_s24 + $0x58] sm:$0xf] %vm1037_vm13, %v1458_v5  ;;  %v1509_v16 = vsel %vm1046_vm14, %v1496_v7, 0.0 }
 0x21e   : > { %v1510_v17 = vadd.f32 %v1509_v16, %v1508_v63  ;;  %v1449_v30 = vpop.f32.mrf.mxu1 }
 0x220   : > { %v1396_v19 = vpop.f32.mrf.mxu0 }
 0x221   : > { %v1450_v15 = vadd.f32 %v1449_v30, %v1396_v19 }
 0x223   : > { %v1459_v21 = vpack.c.bf16 %v1450_v15, %v1450_v15  ;;  %v1482_v23 = vsel %vm1046_vm14, %v1450_v15, 0.0  ;;  %v1497_v26 = vmul.f32 %v1450_v15, %v1450_v15 }
 0x224   : > { %v2713_v14 = vadd.f32 %v1482_v23, %v1481_v8 }
 0x225   : > { %1950 = vst.msk [vmem:[%s2636_s24 + $0x5c] sm:$0xf] %vm1037_vm13, %v1459_v21  ;;  %v1511_v27 = vsel %vm1046_vm14, %v1497_v26, 0.0 }
 0x226   : > { %v2718_v3 = vadd.f32 %v1511_v27, %v1510_v17 }
 0x22c   : > { %1969 = vmatmul.msk.bf16.gmra.mxu3 %vm934_vm12, %v1622_v28 }
 0x22d   : > { %1961 = vmatmul.msk.bf16.gmra.mxu2 %vm934_vm12, %v1561_v29 }
 0x23c   : > { %1970 = vmatmul.msk.bf16.gmra.mxu3 %vm934_vm12, %v1624_v31  ;;  %v1062_v31 = vrot.slane %v2685_v43, 4 }
 0x23d   : > { %1962 = vmatmul.msk.bf16.gmra.mxu2 %vm934_vm12, %v1563_v32 }
 0x24f   : > { %v1228_v33 = vpop.f32.mrf.mxu3 }
 0x250   : > { %v1167_v22 = vpop.f32.mrf.mxu2 }
 0x251   : > { %v1229_v25 = vadd.f32 %v1228_v33, %v1167_v22  ;;  %v1091_v22 = vrot.slane %v2691_v10, 4 }
 0x253   : > { %v1248_v35 = vpack.c.bf16 %v1229_v25, %v1229_v25  ;;  %v1286_v38 = vmul.f32 %v1229_v25, %v1229_v25  ;;  %v1265_v11 = vsel %vm1046_vm14, %v1229_v25, 0.0  ;;  %v1484_v25 = vrot.slane %v2713_v14, 4 }
 0x255   : > { %1915 = vst.msk [vmem:[%s2636_s24 + $0x20] sm:$0xf] %vm1037_vm13, %v1248_v35  ;;  %v1294_v46 = vsel %vm1046_vm14, %v1286_v38, 0.0  ;;  %v1513_v38 = vrot.slane %v2718_v3, 4 }
 0x257   : > { %v1230_v36 = vpop.f32.mrf.mxu3 }
 0x258   : > { %v1169_v37 = vpop.f32.mrf.mxu2 }
 0x259   : > { %v1231_v39 = vadd.f32 %v1230_v36, %v1169_v37  ;;  %v1063_v37 = vadd.f32 %v1062_v31, %v2685_v43 }
 0x25b   : > { %v1249_v40 = vpack.c.bf16 %v1231_v39, %v1231_v39  ;;  %v1266_v41 = vsel %vm1046_vm14, %v1231_v39, 0.0  ;;  %v1287_v42 = vmul.f32 %v1231_v39, %v1231_v39 }
 0x25c   : > { %v1267_v9 = vadd.f32 %v1266_v41, %v1265_v11  ;;  %v1485_v41 = vadd.f32 %v1484_v25, %v2713_v14 }
 0x25d   : > { %1916 = vst.msk [vmem:[%s2636_s24 + $0x24] sm:$0xf] %vm1037_vm13, %v1249_v40  ;;  %v1295_v47 = vsel %vm1046_vm14, %v1287_v42, 0.0  ;;  %v1092_v40 = vadd.f32 %v1091_v22, %v2691_v10 }
 0x25e   : > { %v1296_v48 = vadd.f32 %v1295_v47, %v1294_v46  ;;  %v1064_v47 = vrot.slane %v1063_v37, 2 }
 0x25f   : > { %v1233_v34 = vpop.f32.mrf.mxu3 }
 0x260   : > { %v1172_v49 = vpop.f32.mrf.mxu2  ;;  %v1065_v10 = vadd.f32 %v1064_v47, %v1063_v37 }
 0x261   : > { %v1234_v44 = vadd.f32 %v1233_v34, %v1172_v49  ;;  %v1093_v49 = vrot.slane %v1092_v40, 2 }
 0x263   : > { %v1250_v13 = vpack.c.bf16 %v1234_v44, %v1234_v44  ;;  %v1268_v51 = vsel %vm1046_vm14, %v1234_v44, 0.0  ;;  %v1288_v52 = vmul.f32 %v1234_v44, %v1234_v44  ;;  %v1486_v44 = vrot.slane %v1485_v41, 2 }
 0x264   : > { %v1269_v53 = vadd.f32 %v1268_v51, %v1267_v9 }
 0x265   : > { %1917 = vst.msk [vmem:[%s2636_s24 + $0x28] sm:$0xf] %vm1037_vm13, %v1250_v13  ;;  %v1297_v54 = vsel %vm1046_vm14, %v1288_v52, 0.0 }
 0x266   : > { %v1298_v45 = vadd.f32 %v1297_v54, %v1296_v48  ;;  %v1514_v48 = vadd.f32 %v1513_v38, %v2718_v3 }
 0x267   : > { %v1235_v55 = vpop.f32.mrf.mxu3 }
 0x268   : > { %v1174_v56 = vpop.f32.mrf.mxu2  ;;  %v1515_v14 = vrot.slane %v1514_v48, 2 }
 0x269   : > { %v1236_v18 = vadd.f32 %v1235_v55, %v1174_v56  ;;  %v1094_v56 = vadd.f32 %v1093_v49, %v1092_v40 }
 0x26b   : > { %v1251_v57 = vpack.c.bf16 %v1236_v18, %v1236_v18  ;;  %v1270_v58 = vsel %vm1046_vm14, %v1236_v18, 0.0  ;;  %v1289_v59 = vmul.f32 %v1236_v18, %v1236_v18  ;;  %v1487_v18 = vadd.f32 %v1486_v44, %v1485_v41 }
 0x26c   : > { %v1271_v12 = vadd.f32 %v1270_v58, %v1269_v53 }
 0x26d   : > { %1918 = vst.msk [vmem:[%s2636_s24 + $0x2c] sm:$0xf] %vm1037_vm13, %v1251_v57  ;;  %v1299_v60 = vsel %vm1046_vm14, %v1289_v59, 0.0  ;;  %v1066_v59 = vrot.slane %v1065_v10, 1 }
 0x26e   : > { %v1300_v61 = vadd.f32 %v1299_v60, %v1298_v45 }
 0x26f   : > { %v1238_v62 = vpop.f32.mrf.mxu3 }
 0x270   : > { %v1177_v24 = vpop.f32.mrf.mxu2 }
 0x271   : > { %v1239_v6 = vadd.f32 %v1238_v62, %v1177_v24  ;;  %v1095_v62 = vrot.slane %v1094_v56, 1  ;;  %v1488_v24 = vrot.slane %v1487_v18, 1 }
 0x273   : > { %v1252_v63 = vpack.c.bf16 %v1239_v6, %v1239_v6  ;;  %v1272_v50 = vsel %vm1046_vm14, %v1239_v6, 0.0  ;;  %v1290_v2 = vmul.f32 %v1239_v6, %v1239_v6 }
 0x274   : > { %v1273_v0 = vadd.f32 %v1272_v50, %v1271_v12  ;;  %v1516_v12 = vadd.f32 %v1515_v14, %v1514_v48 }
 0x275   : > { %1919 = vst.msk [vmem:[%s2636_s24 + $0x30] sm:$0xf] %vm1037_vm13, %v1252_v63  ;;  %v1301_v1 = vsel %vm1046_vm14, %v1290_v2, 0.0  ;;  %v1067_v2 = vadd.f32 %v1066_v59, %v1065_v10 }
 0x276   : > { %v1302_v4 = vadd.f32 %v1301_v1, %v1300_v61 }
 0x277   : > { %v1240_v5 = vpop.f32.mrf.mxu3 }
 0x278   : > { %v1179_v20 = vpop.f32.mrf.mxu2 }
 0x279   : > { %v1241_v7 = vadd.f32 %v1240_v5, %v1179_v20 }
 0x27b   : > { %v1253_v8 = vpack.c.bf16 %v1241_v7, %v1241_v7  ;;  %v1274_v16 = vsel %vm1046_vm14, %v1241_v7, 0.0  ;;  %v1291_v17 = vmul.f32 %v1241_v7, %v1241_v7  ;;  %v1096_v7 = vadd.f32 %v1095_v62, %v1094_v56 }
 0x27c   : > { %v1275_v30 = vadd.f32 %v1274_v16, %v1273_v0  ;;  %v1517_v0 = vrot.slane %v1516_v12, 1 }
 0x27d   : > { %1920 = vst.msk [vmem:[%s2636_s24 + $0x34] sm:$0xf] %vm1037_vm13, %v1253_v8  ;;  %v1303_v19 = vsel %vm1046_vm14, %v1291_v17, 0.0  ;;  %v1489_v8 = vadd.f32 %v1488_v24, %v1487_v18 }
 0x27e   : > { %v1304_v15 = vadd.f32 %v1303_v19, %v1302_v4  ;;  %v1518_v19 = vadd.f32 %v1517_v0, %v1516_v12 }
 0x27f   : > { %v1243_v21 = vpop.f32.mrf.mxu3 }
 0x280   : > { %v1182_v23 = vpop.f32.mrf.mxu2 }
 0x281   : > { %v1244_v26 = vadd.f32 %v1243_v21, %v1182_v23 }
 0x283   : > { %v1254_v27 = vpack.c.bf16 %v1244_v26, %v1244_v26  ;;  %v1276_v28 = vsel %vm1046_vm14, %v1244_v26, 0.0  ;;  %v1292_v29 = vmul.f32 %v1244_v26, %v1244_v26 }
 0x284   : > { %v1277_v32 = vadd.f32 %v1276_v28, %v1275_v30 }
 0x285   : > { %1921 = vst.msk [vmem:[%s2636_s24 + $0x38] sm:$0xf] %vm1037_vm13, %v1254_v27  ;;  %v1305_v33 = vsel %vm1046_vm14, %v1292_v29, 0.0 }
 0x286   : > { %v1306_v35 = vadd.f32 %v1305_v33, %v1304_v15 }
 0x287   : > { %v1245_v36 = vpop.f32.mrf.mxu3 }
 0x288   : > { %v1184_v39 = vpop.f32.mrf.mxu2 }
 0x289   : > { %v1246_v11 = vadd.f32 %v1245_v36, %v1184_v39 }
 0x28b   : > { %v1255_v42 = vpack.c.bf16 %v1246_v11, %v1246_v11  ;;  %v1278_v9 = vsel %vm1046_vm14, %v1246_v11, 0.0  ;;  %v1293_v46 = vmul.f32 %v1246_v11, %v1246_v11 }
 0x28c   : > { %v1279_v34 = vadd.f32 %v1278_v9, %v1277_v32 }
 0x28d   : > { %1922 = vst.msk [vmem:[%s2636_s24 + $0x3c] sm:$0xf] %vm1037_vm13, %v1255_v42  ;;  %v1307_v43 = vsel %vm1046_vm14, %v1293_v46, 0.0 }
 0x28e   : > { %v1280_v13 = vrot.slane %v1279_v34, 4  ;;  %v1308_v51 = vadd.f32 %v1307_v43, %v1306_v35 }
 0x28f   : > { %v1652_v52 = vpop.f32.mrf.mxu3 }
 0x290   : > { %v1281_v53 = vadd.f32 %v1280_v13, %v1279_v34  ;;  %v1309_v54 = vrot.slane %v1308_v51, 4  ;;  %v1591_v45 = vpop.f32.mrf.mxu2 }
 0x291   : > { %v1653_v55 = vadd.f32 %v1652_v52, %v1591_v45 }
 0x292   : > { %v1282_v3 = vrot.slane %v1281_v53, 2  ;;  %v1310_v57 = vadd.f32 %v1309_v54, %v1308_v51 }
 0x293   : > { %v1672_v58 = vpack.c.bf16 %v1653_v55, %v1653_v55  ;;  %v1710_v42 = vmul.f32 %v1653_v55, %v1653_v55  ;;  %v1689_v47 = vsel %vm1046_vm14, %v1653_v55, 0.0 }
 0x294   : > { %v1283_v60 = vadd.f32 %v1282_v3, %v1281_v53  ;;  %v1311_v61 = vrot.slane %v1310_v57, 2 }
 0x295   : > { %1971 = vst.msk [vmem:[%s2636_s24 + $0x60] sm:$0xf] %vm1037_vm13, %v1672_v58  ;;  %v1718_v44 = vsel %vm1046_vm14, %v1710_v42, 0.0 }
 0x296   : > { %v1284_v6 = vrot.slane %v1283_v60, 1  ;;  %v1312_v63 = vadd.f32 %v1311_v61, %v1310_v57 }
 0x297   : > { %v1654_v50 = vpop.f32.mrf.mxu3 }
 0x298   : > { %v1285_v1 = vadd.f32 %v1284_v6, %v1283_v60  ;;  %v1313_v4 = vrot.slane %v1312_v63, 1  ;;  %v1593_v5 = vpop.f32.mrf.mxu2 }
 0x299   : > { %v1655_v20 = vadd.f32 %v1654_v50, %v1593_v5 }
 0x29a   : > { %v1314_v16 = vadd.f32 %v1313_v4, %v1312_v63  ;;  %v1315_v17 = vadd.f32 %v1285_v1, %v1067_v2 }
 0x29b   : > { %v1673_v30 = vpack.c.bf16 %v1655_v20, %v1655_v20  ;;  %v1711_v40 = vmul.f32 %v1655_v20, %v1655_v20  ;;  %v1690_v9 = vsel %vm1046_vm14, %v1655_v20, 0.0 }
 0x29c   : > { %v1316_v15 = vadd.f32 %v1314_v16, %v1096_v7  ;;  %v2766_v21 = vadd.f32 %v1489_v8, %v1315_v17  ;;  %v1691_v13 = vadd.f32 %v1690_v9, %v1689_v47 }
 0x29d   : > { %1972 = vst.msk [vmem:[%s2636_s24 + $0x64] sm:$0xf] %vm1037_vm13, %v1673_v30  ;;  %v1719_v48 = vsel %vm1046_vm14, %v1711_v40, 0.0 }
 0x29e   : > { %v2770_v23 = vadd.f32 %v1518_v19, %v1316_v15  ;;  %v1720_v54 = vadd.f32 %v1719_v48, %v1718_v44 }
 0x29f   : > { %v1657_v26 = vpop.f32.mrf.mxu3 }
 0x2a0   : > { %v1596_v27 = vpop.f32.mrf.mxu2 }
 0x2a1   : > { %v1658_v28 = vadd.f32 %v1657_v26, %v1596_v27 }
 0x2a3   : > { %v1674_v29 = vpack.c.bf16 %v1658_v28, %v1658_v28  ;;  %v1712_v46 = vmul.f32 %v1658_v28, %v1658_v28  ;;  %v1692_v34 = vsel %vm1046_vm14, %v1658_v28, 0.0 }
 0x2a4   : > { %v1693_v45 = vadd.f32 %v1692_v34, %v1691_v13 }
 0x2a5   : > { %1973 = vst.msk [vmem:[%s2636_s24 + $0x68] sm:$0xf] %vm1037_vm13, %v1674_v29  ;;  %v1721_v52 = vsel %vm1046_vm14, %v1712_v46, 0.0 }
 0x2a6   : > { %v1722_v57 = vadd.f32 %v1721_v52, %v1720_v54 }
 0x2a7   : > { %v1659_v31 = vpop.f32.mrf.mxu3 }
 0x2a8   : > { %v1598_v32 = vpop.f32.mrf.mxu2 }
 0x2a9   : > { %v1660_v33 = vadd.f32 %v1659_v31, %v1598_v32 }
 0x2ab   : > { %v1675_v22 = vpack.c.bf16 %v1660_v33, %v1660_v33  ;;  %v1713_v43 = vmul.f32 %v1660_v33, %v1660_v33  ;;  %v1694_v10 = vsel %vm1046_vm14, %v1660_v33, 0.0 }
 0x2ac   : > { %v1695_v58 = vadd.f32 %v1694_v10, %v1693_v45 }
 0x2ad   : > { %1974 = vst.msk [vmem:[%s2636_s24 + $0x6c] sm:$0xf] %vm1037_vm13, %v1675_v22  ;;  %v1723_v55 = vsel %vm1046_vm14, %v1713_v43, 0.0 }
 0x2ae   : > { %v1724_v61 = vadd.f32 %v1723_v55, %v1722_v57 }
 0x2af   : > { %v1662_v25 = vpop.f32.mrf.mxu3 }
 0x2b0   : > { %v1601_v35 = vpop.f32.mrf.mxu2 }
 0x2b1   : > { %v1663_v36 = vadd.f32 %v1662_v25, %v1601_v35 }
 0x2b3   : > { %v1676_v37 = vpack.c.bf16 %v1663_v36, %v1663_v36  ;;  %v1714_v14 = vmul.f32 %v1663_v36, %v1663_v36  ;;  %v1696_v56 = vsel %vm1046_vm14, %v1663_v36, 0.0 }
 0x2b4   : > { %v1697_v62 = vadd.f32 %v1696_v56, %v1695_v58 }
 0x2b5   : > { %1975 = vst.msk [vmem:[%s2636_s24 + $0x70] sm:$0xf] %vm1037_vm13, %v1676_v37  ;;  %v1725_v59 = vsel %vm1046_vm14, %v1714_v14, 0.0 }
 0x2b6   : > { %v1726_v50 = vadd.f32 %v1725_v59, %v1724_v61 }
 0x2b7   : > { %v1664_v38 = vpop.f32.mrf.mxu3 }
 0x2b8   : > { %v1603_v39 = vpop.f32.mrf.mxu2 }
 0x2b9   : > { %v1665_v11 = vadd.f32 %v1664_v38, %v1603_v39 }
 0x2bb   : > { %v1677_v41 = vpack.c.bf16 %v1665_v11, %v1665_v11  ;;  %v1715_v18 = vmul.f32 %v1665_v11, %v1665_v11  ;;  %v1698_v12 = vsel %vm1046_vm14, %v1665_v11, 0.0 }
 0x2bc   : > { %v1699_v2 = vadd.f32 %v1698_v12, %v1697_v62 }
 0x2bd   : > { %1976 = vst.msk [vmem:[%s2636_s24 + $0x74] sm:$0xf] %vm1037_vm13, %v1677_v41  ;;  %v1727_v24 = vsel %vm1046_vm14, %v1715_v18, 0.0 }
 0x2be   : > { %v1728_v5 = vadd.f32 %v1727_v24, %v1726_v50 }
 0x2bf   : > { %v1667_v49 = vpop.f32.mrf.mxu3 }
 0x2c0   : > { %v1606_v51 = vpop.f32.mrf.mxu2 }
 0x2c1   : > { %v1668_v53 = vadd.f32 %v1667_v49, %v1606_v51 }
 0x2c3   : > { %v1678_v3 = vpack.c.bf16 %v1668_v53, %v1668_v53  ;;  %v1716_v60 = vmul.f32 %v1668_v53, %v1668_v53  ;;  %v1700_v6 = vsel %vm1046_vm14, %v1668_v53, 0.0 }
 0x2c4   : > { %v1701_v20 = vadd.f32 %v1700_v6, %v1699_v2 }
 0x2c5   : > { %1977 = vst.msk [vmem:[%s2636_s24 + $0x78] sm:$0xf] %vm1037_vm13, %v1678_v3  ;;  %v1729_v1 = vsel %vm1046_vm14, %v1716_v60, 0.0 }
 0x2c6   : > { %v1730_v17 = vadd.f32 %v1729_v1, %v1728_v5 }
 0x2c7   : > { %v1669_v63 = vpop.f32.mrf.mxu3 }
 0x2c8   : > { %v1608_v0 = vpop.f32.mrf.mxu2 }
 0x2c9   : > { %v1670_v4 = vadd.f32 %v1669_v63, %v1608_v0 }
 0x2cb   : > { %v1679_v7 = vpack.c.bf16 %v1670_v4, %v1670_v4  ;;  %v1702_v8 = vsel %vm1046_vm14, %v1670_v4, 0.0  ;;  %v1717_v16 = vmul.f32 %v1670_v4, %v1670_v4 }
 0x2cc   : > { %v1703_v30 = vadd.f32 %v1702_v8, %v1701_v20 }
 0x2cd   : > { %1978 = vst.msk [vmem:[%s2636_s24 + $0x7c] sm:$0xf] %vm1037_vm13, %v1679_v7  ;;  %v1731_v19 = vsel %vm1046_vm14, %v1717_v16, 0.0 }
 0x2ce   : > { %v1704_v15 = vrot.slane %v1703_v30, 4  ;;  %v1732_v26 = vadd.f32 %v1731_v19, %v1730_v17 }
 0x2d0   : > { %v1705_v27 = vadd.f32 %v1704_v15, %v1703_v30  ;;  %v1733_v28 = vrot.slane %v1732_v26, 4 }
 0x2d2   : > { %v1706_v29 = vrot.slane %v1705_v27, 2  ;;  %v1734_v31 = vadd.f32 %v1733_v28, %v1732_v26 }
 0x2d4   : > { %v1707_v32 = vadd.f32 %v1706_v29, %v1705_v27  ;;  %v1735_v33 = vrot.slane %v1734_v31, 2 }
 0x2d6   : > { %v1708_v22 = vrot.slane %v1707_v32, 1  ;;  %v1736_v25 = vadd.f32 %v1735_v33, %v1734_v31 }
 0x2d8   : > { %v1709_v35 = vadd.f32 %v1708_v22, %v1707_v32  ;;  %v1737_v36 = vrot.slane %v1736_v25, 1 }
 0x2da   : > { %v1738_v37 = vadd.f32 %v1737_v36, %v1736_v25  ;;  %v1739_v38 = vadd.f32 %v1709_v35, %v2766_v21 }
 0x2dc   : > { %v1740_v39 = vadd.f32 %v1738_v37, %v2770_v23 }
 0x2de   : > { %v1742_v11 = vsel %vm578_vm3, %v1739_v38, %v1740_v39 }
 0x2df   : > { %1744 = vst.msk [vmem:[%s235_s28] sm:$0x3] %vm1743_vm15, %v1742_v11 }
 0x2e0 PF: > { %s16_s18 = sadd.s32 1, %s2210_s18  }
 0x2e1   : > { %p13_p4 = scmp.ge.s32.totalorder %s16_s18, 4  }
 0x2e3   :  { %15 = sbr.rel (!%p13_p4) target bundleno = 1 (0x1), region = 90 }

</bundles_post_ra>
